<compile_context>
chip_gen: v7x
topology: tpu7x:2x2x1
jax: 0.10.0
libtpu: 0.0.40
codegen_flags: <defaults>
</compile_context>

<pallas_src>
import jax
import jax.numpy as jnp
from jax.experimental import pallas as pl
from jax.experimental.pallas import tpu as pltpu

PAD_IDX = 0  # vocab.char2id['<pad>'] == 0 in the assignment's vocab


def _model_emb_kernel(idx_ref, wbig_ref, bconv_ref, whw_ref, bhw_ref, out_ref):
    """One grid step processes a tile of TN words end-to-end."""
    idx = idx_ref[...]                                   # (TN, MWL) int32
    TN, MWL = idx.shape
    D = bconv_ref.shape[1]
    Vp = wbig_ref.shape[0] // MWL
    LD = wbig_ref.shape[1]                               # L * D
    L = LD // D
    PD = out_ref.shape[1]                                # P * D (128 when D < 128)
    P = PD // D
    R = TN // P

    # --- one-hot, 2-D and lane-dense: (TN, MWL*Vp) bf16 -------------------------------
    # int32 compare (v5e has no bf16 VPU); each Vp-wide block is vreg-aligned so the
    # lane-concatenate is pure placement, not an XLU shuffle.
    iota_v = jax.lax.broadcasted_iota(jnp.int32, (TN, Vp), 1)
    onehot = jnp.concatenate(
        [(idx[:, t:t + 1] == iota_v).astype(jnp.bfloat16) for t in range(MWL)],
        axis=1)                                          # (TN, MWL*Vp)

    # --- embedding + Conv1d fused: one block-Toeplitz matmul on the MXU ---------------
    conv = jnp.dot(onehot, wbig_ref[...],
                   preferred_element_type=jnp.float32)   # (TN, L*D) f32

    # --- max-pool over time (bias + ReLU commute with max -> applied once afterwards) -
    if LD > 128 and LD % 128 == 0 and 128 % D == 0:
        acc = conv[:, :128]
        for c in range(1, LD // 128):                    # vreg-aligned folds first
            acc = jnp.maximum(acc, conv[:, c * 128:(c + 1) * 128])
        nblk = 128 // D
    else:
        acc = conv
        nblk = L
    pooled = acc[:, :D]
    for b in range(1, nblk):                             # remaining static lane-slice maxes
        pooled = jnp.maximum(pooled, acc[:, b * D:(b + 1) * D])
    pooled = jnp.maximum(pooled + bconv_ref[...], 0.0)   # (TN, D) f32

    # --- pack P sublane-aligned row-blocks into the 128-lane axis ---------------------
    if P == 1:
        xp = pooled
    else:
        xp = jnp.concatenate(
            [pooled[p * R:(p + 1) * R, :] for p in range(P)], axis=1)   # (R, P*D) f32

    # --- Highway on packed blocks: block-diagonal [proj | gate] matmul ----------------
    h = jnp.dot(xp.astype(jnp.bfloat16), whw_ref[...],
                preferred_element_type=jnp.float32) + bhw_ref[...]      # (R, 2*P*D) f32
    proj = jnp.maximum(h[:, :PD], 0.0)
    gate = jax.nn.sigmoid(h[:, PD:])
    out_ref[...] = xp + gate * (proj - xp)               # lane-dense (R, P*D) store


def model_embeddings_forward(char_idx, params, *, tile_n=None):
    """char_idx: (SL, B, MWL) int  ->  (SL, B, D) float32."""
    SL, B, MWL = char_idx.shape
    table = params["emb_table"]                          # (V, D) f32
    V, D = table.shape
    w_conv = params["w_conv"]                            # torch Conv1d layout (out, in, K)
    K = w_conv.shape[2]
    if MWL < K:
        raise ValueError(f"max_word_length ({MWL}) must be >= conv kernel size ({K})")
    L = MWL - K + 1
    N = SL * B

    # lane-packing factor for the post-conv tail / output
    P = 128 // D if (D < 128 and 128 % D == 0) else 1
    align = 8 * P

    # --- generation-aware tile size -----------------------------------------------------
    try:
        vmem_cap = int(getattr(pltpu.get_tpu_info(), "vmem_capacity_bytes", 64 * 1024 * 1024))
    except Exception:                                    # not on TPU / API mismatch -> conservative
        vmem_cap = 64 * 1024 * 1024
    big_vmem = vmem_cap >= 96 * 1024 * 1024              # v5e/v6e: 128 MiB, v7x: 64 MiB per core
    if tile_n is None:
        tile_n = 2048 if big_vmem else 1024

    n_ceil = -(-N // align) * align
    tile_n = max(align, min((tile_n // align) * align, n_ceil))
    # keep >= 2 grid steps when the problem allows it, so both v7x TensorCores get work
    if n_ceil >= 2 * align and tile_n > n_ceil // 2:
        tile_n = -(-(n_ceil // 2) // align) * align
    n_grid = -(-n_ceil // tile_n)
    N_pad = n_grid * tile_n

    Vp = -(-V // 128) * 128                              # pad char vocab to full lanes (zero rows inert)

    idx2d = char_idx.reshape(N, MWL).astype(jnp.int32)
    idx2d = jnp.pad(idx2d, ((0, N_pad - N), (0, 0)), constant_values=PAD_IDX)

    # --- fold embedding table + conv weight into one block-Toeplitz matrix --------------
    table_p = jnp.pad(table, ((0, Vp - V), (0, 0)))                      # (Vp, D) f32
    folded = jnp.einsum('ci,oik->kco', table_p, w_conv)                  # (K, Vp, D) f32
    wbig = jnp.zeros((MWL, Vp, L, D), jnp.float32)
    for l in range(L):
        wbig = wbig.at[l:l + K, :, l, :].set(folded)
    wbig = wbig.reshape(MWL * Vp, L * D).astype(jnp.bfloat16)            # (MWL*Vp, L*D)

    bconv = params["b_conv"].reshape(1, D).astype(jnp.float32)

    # --- block-diagonal (per packed word) fused highway weights -------------------------
    eyeP = jnp.eye(P, dtype=jnp.float32)
    whw = jnp.concatenate([jnp.kron(eyeP, params["w_proj"].T),
                           jnp.kron(eyeP, params["w_gate"].T)],
                          axis=1).astype(jnp.bfloat16)                   # (P*D, 2*P*D)
    bhw = jnp.concatenate([jnp.tile(params["b_proj"], P),
                           jnp.tile(params["b_gate"], P)]
                          ).reshape(1, 2 * P * D).astype(jnp.float32)

    # --- advisory cost + explicit per-step VMEM accounting ------------------------------
    flops = 2 * N_pad * MWL * Vp * L * D + 4 * N_pad * P * D * D
    cost = pl.CostEstimate(
        flops=int(flops),
        transcendentals=int(N_pad * D),
        bytes_accessed=int(N_pad * MWL * 4 + N_pad * D * 4
                           + MWL * Vp * L * D * 2 + 2 * P * D * P * D * 2
                           + (D + 2 * P * D) * 4))
    step_bytes = (2 * tile_n * MWL * 4                        # idx block (double-buffered)
                  + tile_n * Vp * 4                           # int32 lane iota
                  + tile_n * MWL * Vp * 2                     # bf16 one-hot
                  + tile_n * L * D * 4                        # conv accumulator f32
                  + 6 * tile_n * D * 4                        # pooled / packed / highway temps
                  + 2 * tile_n * D * 4                        # output block (double-buffered)
                  + 2 * (MWL * Vp * L * D + 2 * P * D * P * D) * 2   # weights (double-buffered)
                  + 2 * 1024 * 1024)                          # compiler-internal scratch headroom
    vmem_cap_limit = (100 if big_vmem else 40) * 1024 * 1024  # v5e/v6e vs v7x headroom
    vmem_limit = int(min(vmem_cap_limit, max(24 * 1024 * 1024, int(1.25 * step_bytes))))

    out_packed = pl.pallas_call(
        _model_emb_kernel,
        out_shape=jax.ShapeDtypeStruct((N_pad // P, P * D), jnp.float32),
        grid_spec=pltpu.PrefetchScalarGridSpec(
            num_scalar_prefetch=0,
            grid=(n_grid,),
            in_specs=[
                pl.BlockSpec((tile_n, MWL), lambda i: (i, 0)),       # char ids
                pl.BlockSpec((MWL * Vp, L * D), lambda i: (0, 0)),   # fused emb+conv (block-Toeplitz)
                pl.BlockSpec((1, D), lambda i: (0, 0)),              # conv bias
                pl.BlockSpec((P * D, 2 * P * D), lambda i: (0, 0)),  # block-diag [Wproj^T | Wgate^T]
                pl.BlockSpec((1, 2 * P * D), lambda i: (0, 0)),      # packed [b_proj | b_gate]
            ],
            out_specs=pl.BlockSpec((tile_n // P, P * D), lambda i: (i, 0)),
        ),
        compiler_params=pltpu.CompilerParams(
            dimension_semantics=("parallel",),
            vmem_limit_bytes=vmem_limit),
        cost_estimate=cost,
    )(idx2d, wbig, bconv, whw, bhw)

    # undo the lane packing (pure layout plumbing in XLA, one pass over the small output)
    out = (out_packed
           .reshape(n_grid, tile_n // P, P, D)
           .transpose(0, 2, 1, 3)
           .reshape(N_pad, D))[:N]
    return out.reshape(SL, B, D)


def reference_forward(char_idx, params):
    """Plain-JAX (f32) reference matching the PyTorch forward semantics."""
    table = params["emb_table"]
    w_conv, b_conv = params["w_conv"], params["b_conv"]
    w_proj, b_proj = params["w_proj"], params["b_proj"]
    w_gate, b_gate = params["w_gate"], params["b_gate"]
    K = w_conv.shape[2]
    MWL = char_idx.shape[-1]
    L = MWL - K + 1

    emb = table[char_idx]                                # (SL, B, MWL, D)
    x = jnp.transpose(emb, (0, 1, 3, 2))                 # (SL, B, D, MWL)  NCL
    conv = b_conv[None, None, :, None]
    for k in range(K):
        conv = conv + jnp.einsum('sbit,oi->sbot', x[..., k:k + L], w_conv[:, :, k])
    pooled = jnp.max(jax.nn.relu(conv), axis=-1)         # (SL, B, D)
    proj = jax.nn.relu(pooled @ w_proj.T + b_proj)
    gate = jax.nn.sigmoid(pooled @ w_gate.T + b_gate)
    return gate * proj + (1.0 - gate) * pooled


def init_params(key, vocab_size, embed_size, kernel_size=5):
    ks = jax.random.split(key, 7)
    D, V, K = embed_size, vocab_size, kernel_size
    emb = jax.random.normal(ks[0], (V, D), jnp.float32) * 0.1
    emb = emb.at[PAD_IDX].set(0.0)                       # nn.Embedding padding_idx
    return {
        "emb_table": emb,
        "w_conv": jax.random.normal(ks[1], (D, D, K), jnp.float32) * 0.05,
        "b_conv": jax.random.normal(ks[2], (D,), jnp.float32) * 0.05,
        "w_proj": jax.random.normal(ks[3], (D, D), jnp.float32) * 0.05,
        "b_proj": jax.random.normal(ks[4], (D,), jnp.float32) * 0.05,
        "w_gate": jax.random.normal(ks[5], (D, D), jnp.float32) * 0.05,
        "b_gate": jax.random.normal(ks[6], (D,), jnp.float32) * 0.05,
    }


if __name__ == "__main__":
    # small shapes: sentence_length=4, batch=4, max_word_length=12,
    # char vocab=96, embed_size=32, kernel_size=5
    SL, B, MWL, V, D = 4, 4, 12, 96, 32
    key = jax.random.PRNGKey(0)
    k_param, k_in = jax.random.split(key)
    params = init_params(k_param, vocab_size=V, embed_size=D, kernel_size=5)
    char_idx = jax.random.randint(k_in, (SL, B, MWL), 0, V, dtype=jnp.int32)

    out = model_embeddings_forward(char_idx, params)
    out = jax.block_until_ready(out)

    ref = reference_forward(char_idx, params)
    assert out.shape == (SL, B, D)
    # bf16 MXU operands (f32 accumulation) -> slightly relaxed tolerance vs the f32 reference
    assert jnp.allclose(out, ref, atol=2e-2, rtol=2e-2), "mismatch vs JAX reference"
    print("KERNEL_OK")
</pallas_src>

<mosaic_0001>
module attributes {stable_mosaic.version = 11 : i64} {
  func.func @_model_emb_kernel(%arg0: i32, %arg1: memref<32x12xi32, #tpu.memory_space<vmem>>, %arg2: memref<1536x256xbf16, #tpu.memory_space<vmem>>, %arg3: memref<1x32xf32, #tpu.memory_space<vmem>>, %arg4: memref<128x256xbf16, #tpu.memory_space<vmem>>, %arg5: memref<1x256xf32, #tpu.memory_space<vmem>>, %arg6: memref<8x128xf32, #tpu.memory_space<vmem>>) attributes {dimension_semantics = [#tpu.dimension_semantics<parallel>], iteration_bounds = array<i64: 1>, scalar_prefetch = 0 : i64, scratch_operands = 0 : i64, tpu.core_type = #tpu.core_type<tc>, window_params = [{transform_indices = @transform_0, window_bounds = array<i64: 32, 12>}, {pipeline_mode = #tpu.pipeline_mode<synchronous>, transform_indices = @transform_1, window_bounds = array<i64: 1536, 256>}, {pipeline_mode = #tpu.pipeline_mode<synchronous>, transform_indices = @transform_2, window_bounds = array<i64: 1, 32>}, {pipeline_mode = #tpu.pipeline_mode<synchronous>, transform_indices = @transform_3, window_bounds = array<i64: 128, 256>}, {pipeline_mode = #tpu.pipeline_mode<synchronous>, transform_indices = @transform_4, window_bounds = array<i64: 1, 256>}, {transform_indices = @transform_5, window_bounds = array<i64: 8, 128>}]} {
    %c0 = arith.constant 0 : index
    %c0_0 = arith.constant 0 : index
    %0 = vector.load %arg1[%c0, %c0_0] : memref<32x12xi32, #tpu.memory_space<vmem>>, vector<32x12xi32>
    %1 = tpu.iota {dimensions = array<i32: 1>} : vector<32x128xi32>
    %2 = vector.extract_strided_slice %0 {offsets = [0, 0], sizes = [32, 1], strides = [1, 1]} : vector<32x12xi32> to vector<32x1xi32>
    %3 = vector.broadcast %2 : vector<32x1xi32> to vector<32x128xi32>
    %4 = arith.cmpi eq, %3, %1 : vector<32x128xi32>
    %5 = arith.extui %4 : vector<32x128xi1> to vector<32x128xi32>
    %6 = arith.sitofp %5 : vector<32x128xi32> to vector<32x128xf32>
    %7 = arith.truncf %6 : vector<32x128xf32> to vector<32x128xbf16>
    %8 = vector.extract_strided_slice %0 {offsets = [0, 1], sizes = [32, 1], strides = [1, 1]} : vector<32x12xi32> to vector<32x1xi32>
    %9 = vector.broadcast %8 : vector<32x1xi32> to vector<32x128xi32>
    %10 = arith.cmpi eq, %9, %1 : vector<32x128xi32>
    %11 = arith.extui %10 : vector<32x128xi1> to vector<32x128xi32>
    %12 = arith.sitofp %11 : vector<32x128xi32> to vector<32x128xf32>
    %13 = arith.truncf %12 : vector<32x128xf32> to vector<32x128xbf16>
    %14 = vector.extract_strided_slice %0 {offsets = [0, 2], sizes = [32, 1], strides = [1, 1]} : vector<32x12xi32> to vector<32x1xi32>
    %15 = vector.broadcast %14 : vector<32x1xi32> to vector<32x128xi32>
    %16 = arith.cmpi eq, %15, %1 : vector<32x128xi32>
    %17 = arith.extui %16 : vector<32x128xi1> to vector<32x128xi32>
    %18 = arith.sitofp %17 : vector<32x128xi32> to vector<32x128xf32>
    %19 = arith.truncf %18 : vector<32x128xf32> to vector<32x128xbf16>
    %20 = vector.extract_strided_slice %0 {offsets = [0, 3], sizes = [32, 1], strides = [1, 1]} : vector<32x12xi32> to vector<32x1xi32>
    %21 = vector.broadcast %20 : vector<32x1xi32> to vector<32x128xi32>
    %22 = arith.cmpi eq, %21, %1 : vector<32x128xi32>
    %23 = arith.extui %22 : vector<32x128xi1> to vector<32x128xi32>
    %24 = arith.sitofp %23 : vector<32x128xi32> to vector<32x128xf32>
    %25 = arith.truncf %24 : vector<32x128xf32> to vector<32x128xbf16>
    %26 = vector.extract_strided_slice %0 {offsets = [0, 4], sizes = [32, 1], strides = [1, 1]} : vector<32x12xi32> to vector<32x1xi32>
    %27 = vector.broadcast %26 : vector<32x1xi32> to vector<32x128xi32>
    %28 = arith.cmpi eq, %27, %1 : vector<32x128xi32>
    %29 = arith.extui %28 : vector<32x128xi1> to vector<32x128xi32>
    %30 = arith.sitofp %29 : vector<32x128xi32> to vector<32x128xf32>
    %31 = arith.truncf %30 : vector<32x128xf32> to vector<32x128xbf16>
    %32 = vector.extract_strided_slice %0 {offsets = [0, 5], sizes = [32, 1], strides = [1, 1]} : vector<32x12xi32> to vector<32x1xi32>
    %33 = vector.broadcast %32 : vector<32x1xi32> to vector<32x128xi32>
    %34 = arith.cmpi eq, %33, %1 : vector<32x128xi32>
    %35 = arith.extui %34 : vector<32x128xi1> to vector<32x128xi32>
    %36 = arith.sitofp %35 : vector<32x128xi32> to vector<32x128xf32>
    %37 = arith.truncf %36 : vector<32x128xf32> to vector<32x128xbf16>
    %38 = vector.extract_strided_slice %0 {offsets = [0, 6], sizes = [32, 1], strides = [1, 1]} : vector<32x12xi32> to vector<32x1xi32>
    %39 = vector.broadcast %38 : vector<32x1xi32> to vector<32x128xi32>
    %40 = arith.cmpi eq, %39, %1 : vector<32x128xi32>
    %41 = arith.extui %40 : vector<32x128xi1> to vector<32x128xi32>
    %42 = arith.sitofp %41 : vector<32x128xi32> to vector<32x128xf32>
    %43 = arith.truncf %42 : vector<32x128xf32> to vector<32x128xbf16>
    %44 = vector.extract_strided_slice %0 {offsets = [0, 7], sizes = [32, 1], strides = [1, 1]} : vector<32x12xi32> to vector<32x1xi32>
    %45 = vector.broadcast %44 : vector<32x1xi32> to vector<32x128xi32>
    %46 = arith.cmpi eq, %45, %1 : vector<32x128xi32>
    %47 = arith.extui %46 : vector<32x128xi1> to vector<32x128xi32>
    %48 = arith.sitofp %47 : vector<32x128xi32> to vector<32x128xf32>
    %49 = arith.truncf %48 : vector<32x128xf32> to vector<32x128xbf16>
    %50 = vector.extract_strided_slice %0 {offsets = [0, 8], sizes = [32, 1], strides = [1, 1]} : vector<32x12xi32> to vector<32x1xi32>
    %51 = vector.broadcast %50 : vector<32x1xi32> to vector<32x128xi32>
    %52 = arith.cmpi eq, %51, %1 : vector<32x128xi32>
    %53 = arith.extui %52 : vector<32x128xi1> to vector<32x128xi32>
    %54 = arith.sitofp %53 : vector<32x128xi32> to vector<32x128xf32>
    %55 = arith.truncf %54 : vector<32x128xf32> to vector<32x128xbf16>
    %56 = vector.extract_strided_slice %0 {offsets = [0, 9], sizes = [32, 1], strides = [1, 1]} : vector<32x12xi32> to vector<32x1xi32>
    %57 = vector.broadcast %56 : vector<32x1xi32> to vector<32x128xi32>
    %58 = arith.cmpi eq, %57, %1 : vector<32x128xi32>
    %59 = arith.extui %58 : vector<32x128xi1> to vector<32x128xi32>
    %60 = arith.sitofp %59 : vector<32x128xi32> to vector<32x128xf32>
    %61 = arith.truncf %60 : vector<32x128xf32> to vector<32x128xbf16>
    %62 = vector.extract_strided_slice %0 {offsets = [0, 10], sizes = [32, 1], strides = [1, 1]} : vector<32x12xi32> to vector<32x1xi32>
    %63 = vector.broadcast %62 : vector<32x1xi32> to vector<32x128xi32>
    %64 = arith.cmpi eq, %63, %1 : vector<32x128xi32>
    %65 = arith.extui %64 : vector<32x128xi1> to vector<32x128xi32>
    %66 = arith.sitofp %65 : vector<32x128xi32> to vector<32x128xf32>
    %67 = arith.truncf %66 : vector<32x128xf32> to vector<32x128xbf16>
    %68 = vector.extract_strided_slice %0 {offsets = [0, 11], sizes = [32, 1], strides = [1, 1]} : vector<32x12xi32> to vector<32x1xi32>
    %69 = vector.broadcast %68 : vector<32x1xi32> to vector<32x128xi32>
    %70 = arith.cmpi eq, %69, %1 : vector<32x128xi32>
    %71 = arith.extui %70 : vector<32x128xi1> to vector<32x128xi32>
    %72 = arith.sitofp %71 : vector<32x128xi32> to vector<32x128xf32>
    %73 = arith.truncf %72 : vector<32x128xf32> to vector<32x128xbf16>
    %74 = tpu.concatenate %7, %13, %19, %25, %31, %37, %43, %49, %55, %61, %67, %73 in 1 : vector<32x128xbf16>, vector<32x128xbf16>, vector<32x128xbf16>, vector<32x128xbf16>, vector<32x128xbf16>, vector<32x128xbf16>, vector<32x128xbf16>, vector<32x128xbf16>, vector<32x128xbf16>, vector<32x128xbf16>, vector<32x128xbf16>, vector<32x128xbf16> -> vector<32x1536xbf16>
    %c0_1 = arith.constant 0 : index
    %c0_2 = arith.constant 0 : index
    %75 = vector.load %arg2[%c0_1, %c0_2] : memref<1536x256xbf16, #tpu.memory_space<vmem>>, vector<1536x256xbf16>
    %cst = arith.constant dense<0.000000e+00> : vector<32x256xf32>
    %76 = tpu.matmul %74, %75, %cst {dimension_numbers = #tpu.dot_dimension_numbers<[1], [0], [0], [1], [0, 0, 1, 1], [], []>} : vector<32x1536xbf16>, vector<1536x256xbf16>, vector<32x256xf32> -> vector<32x256xf32>
    %77 = vector.extract_strided_slice %76 {offsets = [0, 0], sizes = [32, 128], strides = [1, 1]} : vector<32x256xf32> to vector<32x128xf32>
    %78 = vector.extract_strided_slice %76 {offsets = [0, 128], sizes = [32, 128], strides = [1, 1]} : vector<32x256xf32> to vector<32x128xf32>
    %79 = arith.maximumf %77, %78 : vector<32x128xf32>
    %80 = vector.extract_strided_slice %79 {offsets = [0, 0], sizes = [32, 32], strides = [1, 1]} : vector<32x128xf32> to vector<32x32xf32>
    %81 = vector.extract_strided_slice %79 {offsets = [0, 32], sizes = [32, 32], strides = [1, 1]} : vector<32x128xf32> to vector<32x32xf32>
    %82 = arith.maximumf %80, %81 : vector<32x32xf32>
    %83 = vector.extract_strided_slice %79 {offsets = [0, 64], sizes = [32, 32], strides = [1, 1]} : vector<32x128xf32> to vector<32x32xf32>
    %84 = arith.maximumf %82, %83 : vector<32x32xf32>
    %85 = vector.extract_strided_slice %79 {offsets = [0, 96], sizes = [32, 32], strides = [1, 1]} : vector<32x128xf32> to vector<32x32xf32>
    %86 = arith.maximumf %84, %85 : vector<32x32xf32>
    %c0_3 = arith.constant 0 : index
    %c0_4 = arith.constant 0 : index
    %87 = vector.load %arg3[%c0_3, %c0_4] : memref<1x32xf32, #tpu.memory_space<vmem>>, vector<1x32xf32>
    %88 = vector.broadcast %87 : vector<1x32xf32> to vector<32x32xf32>
    %89 = arith.addf %86, %88 : vector<32x32xf32>
    %cst_5 = arith.constant 0.000000e+00 : f32
    %90 = vector.broadcast %cst_5 : f32 to vector<32x32xf32>
    %91 = arith.maximumf %89, %90 : vector<32x32xf32>
    %92 = vector.extract_strided_slice %91 {offsets = [0, 0], sizes = [8, 32], strides = [1, 1]} : vector<32x32xf32> to vector<8x32xf32>
    %93 = vector.extract_strided_slice %91 {offsets = [8, 0], sizes = [8, 32], strides = [1, 1]} : vector<32x32xf32> to vector<8x32xf32>
    %94 = vector.extract_strided_slice %91 {offsets = [16, 0], sizes = [8, 32], strides = [1, 1]} : vector<32x32xf32> to vector<8x32xf32>
    %95 = vector.extract_strided_slice %91 {offsets = [24, 0], sizes = [8, 32], strides = [1, 1]} : vector<32x32xf32> to vector<8x32xf32>
    %96 = tpu.concatenate %92, %93, %94, %95 in 1 : vector<8x32xf32>, vector<8x32xf32>, vector<8x32xf32>, vector<8x32xf32> -> vector<8x128xf32>
    %97 = arith.truncf %96 : vector<8x128xf32> to vector<8x128xbf16>
    %c0_6 = arith.constant 0 : index
    %c0_7 = arith.constant 0 : index
    %98 = vector.load %arg4[%c0_6, %c0_7] : memref<128x256xbf16, #tpu.memory_space<vmem>>, vector<128x256xbf16>
    %cst_8 = arith.constant dense<0.000000e+00> : vector<8x256xf32>
    %99 = tpu.matmul %97, %98, %cst_8 {dimension_numbers = #tpu.dot_dimension_numbers<[1], [0], [0], [1], [0, 0, 1, 1], [], []>} : vector<8x128xbf16>, vector<128x256xbf16>, vector<8x256xf32> -> vector<8x256xf32>
    %c0_9 = arith.constant 0 : index
    %c0_10 = arith.constant 0 : index
    %100 = vector.load %arg5[%c0_9, %c0_10] : memref<1x256xf32, #tpu.memory_space<vmem>>, vector<1x256xf32>
    %101 = vector.broadcast %100 : vector<1x256xf32> to vector<8x256xf32>
    %102 = arith.addf %99, %101 : vector<8x256xf32>
    %103 = vector.extract_strided_slice %102 {offsets = [0, 0], sizes = [8, 128], strides = [1, 1]} : vector<8x256xf32> to vector<8x128xf32>
    %cst_11 = arith.constant 0.000000e+00 : f32
    %104 = vector.broadcast %cst_11 : f32 to vector<8x128xf32>
    %105 = arith.maximumf %103, %104 : vector<8x128xf32>
    %106 = vector.extract_strided_slice %102 {offsets = [0, 128], sizes = [8, 128], strides = [1, 1]} : vector<8x256xf32> to vector<8x128xf32>
    %107 = arith.negf %106 : vector<8x128xf32>
    %108 = math.exp %107 : vector<8x128xf32>
    %cst_12 = arith.constant 1.000000e+00 : f32
    %109 = vector.broadcast %cst_12 : f32 to vector<8x128xf32>
    %110 = arith.addf %109, %108 : vector<8x128xf32>
    %111 = arith.divf %109, %110 : vector<8x128xf32>
    %112 = arith.subf %105, %96 : vector<8x128xf32>
    %113 = arith.mulf %111, %112 : vector<8x128xf32>
    %114 = arith.addf %96, %113 : vector<8x128xf32>
    %c0_13 = arith.constant 0 : index
    %c0_14 = arith.constant 0 : index
    %115 = vector.load %arg6[%c0_13, %c0_14] : memref<8x128xf32, #tpu.memory_space<vmem>>, vector<8x128xf32>
    tpu.vector_store %arg6[%c0_13, %c0_14], %114 {strides = array<i32>} : memref<8x128xf32, #tpu.memory_space<vmem>>, vector<8x128xf32>,
    return
  }
  func.func @transform_0(%arg0: i32) -> (i32, i32) {
    %c0_i32 = arith.constant 0 : i32
    %c0_i32_0 = arith.constant 0 : i32
    return %arg0, %c0_i32 : i32, i32
  }
  func.func @transform_1(%arg0: i32) -> (i32, i32) {
    %c0_i32 = arith.constant 0 : i32
    %c0_i32_0 = arith.constant 0 : i32
    %c0_i32_1 = arith.constant 0 : i32
    return %c0_i32, %c0_i32_0 : i32, i32
  }
  func.func @transform_2(%arg0: i32) -> (i32, i32) {
    %c0_i32 = arith.constant 0 : i32
    %c0_i32_0 = arith.constant 0 : i32
    %c0_i32_1 = arith.constant 0 : i32
    return %c0_i32, %c0_i32_0 : i32, i32
  }
  func.func @transform_3(%arg0: i32) -> (i32, i32) {
    %c0_i32 = arith.constant 0 : i32
    %c0_i32_0 = arith.constant 0 : i32
    %c0_i32_1 = arith.constant 0 : i32
    return %c0_i32, %c0_i32_0 : i32, i32
  }
  func.func @transform_4(%arg0: i32) -> (i32, i32) {
    %c0_i32 = arith.constant 0 : i32
    %c0_i32_0 = arith.constant 0 : i32
    %c0_i32_1 = arith.constant 0 : i32
    return %c0_i32, %c0_i32_0 : i32, i32
  }
  func.func @transform_5(%arg0: i32) -> (i32, i32) {
    %c0_i32 = arith.constant 0 : i32
    %c0_i32_0 = arith.constant 0 : i32
    return %arg0, %c0_i32 : i32, i32
  }
}

</mosaic_0001>

<bundles_post_ra>
// kernel: tpu_custom_call.1
= control target key start
LH: loop header
LB: loop body
LE: loop exit
PB: predicated region body
PF: predicated region fallthrough
CT: control target
= control target key end

     0   :  { %10 = vsyncpa [#allocation3], 0  ;;  %s3193_s0 = inlined_call_operand.vmem [shape: s32[32,12], index: 0, kind: input, shape index: {}]   ;;  %s3194_s1 = inlined_call_operand.hbm [shape: bf16[1536,256], index: 1, kind: input, shape index: {}]   ;;  %s3195_s2 = inlined_call_operand.vmem [shape: f32[1,32], index: 2, kind: input, shape index: {}]   ;;  %s3196_s3 = inlined_call_operand.hbm [shape: bf16[128,256], index: 3, kind: input, shape index: {}]   ;;  %s3197_s4 = inlined_call_operand.vmem [shape: f32[1,256], index: 4, kind: input, shape index: {}]   ;;  %s3198_s5 = inlined_call_operand.hbm [shape: f32[8,128], index: 5, kind: output, shape index: {}]  }
   0x1   :  { %11 = vsyncpa [#allocation6], 0 }
   0x2   :  { %12 = vsyncpa [#allocation4], 0  ;;  %s2898_s18 = smov [#allocation2]   ;;  %s2826_s22 = scalar_lea.hbm %s3194_s1, 24576 }
   0x3   :  { %s20_s19 = sshll.u32 %s2898_s18, 4  ;;  %p2827_p0 = scmp.ne.s32.totalorder %s3194_s1, %s2826_s22  ;;  %s21_s19 = int_to_ptr.vmem [resolvable:$true] %s20_s19 }
   0x4   :  { %p2830_p1 = scmp.lt.u32.totalorder %s2826_s22, %s3194_s1 }
   0x6   :  { %p2832_p2 = pnand %p2830_p1, %p2827_p0 }
   0x8   :  { %2835 = shalt.err (!%p2832_p2)
}
   0x9   :  { %s2836_s27 = scalar_lea.vmem %s21_s19, 24576  ;;  %p2841_p4 = scmp.lt.s32.totalorder %s21_s19, %s21_s19 }
   0xa   :  { %p2837_p3 = scmp.ne.s32.totalorder %s21_s19, %s2836_s27  ;;  %p2842_p5 = scmp.lt.s32.totalorder %s2836_s27, %s2836_s27 }
   0xc   :  { %p2843_p6 = por %p2842_p5, %p2841_p4 }
   0xe   :  { %p2844_p7 = pnand %p2843_p6, %p2837_p3 }
  0x10   :  { %2847 = shalt.err (!%p2844_p7)
}
  0x11   :  { %s2899_s28 = smov 128   ;;  %s2900_s29 = smov 8  }
  0x12   :  { %26 = dma.hbm_to_vmem [thread:$0]  %s3194_s1, 24576, %s21_s19, [#allocation3], %s2899_s28, %s2899_s28, %s2900_s29  }
  0x13   :  { %s2901_s7 = smov [#allocation5]   ;;  %s2848_s11 = scalar_lea.hbm %s3196_s3, 2048 }
  0x14   :  { %s34_s8 = sshll.u32 %s2901_s7, 4  ;;  %p2849_p8 = scmp.ne.s32.totalorder %s3196_s3, %s2848_s11  ;;  %s35_s8 = int_to_ptr.vmem [resolvable:$true] %s34_s8 }
  0x15   :  { %p2852_p9 = scmp.lt.u32.totalorder %s2848_s11, %s3196_s3 }
  0x17   :  { %p2854_p10 = pnand %p2852_p9, %p2849_p8 }
  0x19   :  { %2857 = shalt.err (!%p2854_p10)
}
  0x1a   :  { %s2858_s16 = scalar_lea.vmem %s35_s8, 2048  ;;  %p2863_p12 = scmp.lt.s32.totalorder %s35_s8, %s35_s8 }
  0x1b   :  { %p2859_p11 = scmp.ne.s32.totalorder %s35_s8, %s2858_s16  ;;  %p2864_p13 = scmp.lt.s32.totalorder %s2858_s16, %s2858_s16 }
  0x1d   :  { %p2865_p0 = por %p2864_p13, %p2863_p12 }
  0x1f   :  { %p2866_p1 = pnand %p2865_p0, %p2859_p11 }
  0x21   :  { %2869 = shalt.err (!%p2866_p1)
}
  0x22   :  { %40 = dma.hbm_to_vmem [thread:$0]  %s3196_s3, 2048, %s35_s8, [#allocation6], %s2899_s28, %s2899_s28, %s2900_s29  }
  0x23   :  { %2892 = dma.done.wait [#allocation3], 24576  }
  0x24   :  { %2893 = vsyncadd [#allocation3], 4294942720 }
  0x25   :  { %2894 = dma.done.wait [#allocation6], 2048  }
  0x26   :  { %2895 = vsyncadd [#allocation6], 4294965248  ;;  %v2902_v0 = vmov 7   ;;  %v2903_v1 = vmov 1   ;;  %v2977_v2 = vld [vmem:[%s3193_s0] sm:$0xff]  ;;  %v2984_v3 = vld [vmem:[%s3193_s0 + $0x8] sm:$0xff] }
  0x27   :  { %2472 = vset.pattern.permute.xlu1 %v2902_v0  ;;  %2471 = vset.pattern.permute.xlu0 %v2903_v1  ;;  %v2510_v4 = vld [vmem:[#allocation2 + $0x4] ss:$8 sps:$4 sm:$0xff]   ;;  %v2512_v5 = vld [vmem:[#allocation2] ss:$8 sps:$4 sm:$0xff]   ;;  %v2513_v6 = vld [vmem:[#allocation2 + $0x14] ss:$8 sps:$4 sm:$0xff]  }
  0x28   :  { %239 = vperm.xlu1 %2472, %v2977_v2   ;;  %83 = vperm.xlu0 %2471, %v2977_v2   ;;  %v2516_v7 = vld [vmem:[#allocation2 + $0x304] ss:$8 sps:$4 sm:$0xff]   ;;  %v2518_v8 = vld [vmem:[#allocation2 + $0x300] ss:$8 sps:$4 sm:$0xff]   ;;  %v2515_v9 = vld [vmem:[#allocation2 + $0x10] ss:$8 sps:$4 sm:$0xff]  }
  0x29   :  { %1520 = vmatprep.subr.bf16.mxu1 %v2510_v4  ;;  %1679 = vmatprep.subr.bf16.mxu0 %v2516_v7  ;;  %v2519_v10 = vld [vmem:[#allocation2 + $0x24] ss:$8 sps:$4 sm:$0xff]   ;;  %v2522_v11 = vld [vmem:[#allocation2 + $0x314] ss:$8 sps:$4 sm:$0xff]   ;;  %v2524_v12 = vld [vmem:[#allocation2 + $0x310] ss:$8 sps:$4 sm:$0xff]  }
  0x2a   :  { %1521 = vmatpush1.bf16.msra.mxu1 %v2512_v5  ;;  %1680 = vmatpush1.bf16.msra.mxu0 %v2518_v8  ;;  %v2904_v13 = vmov 0   ;;  %v2528_v14 = vld [vmem:[#allocation2 + $0x324] ss:$8 sps:$4 sm:$0xff]   ;;  %v2521_v15 = vld [vmem:[#allocation2 + $0x20] ss:$8 sps:$4 sm:$0xff]   ;;  %v2905_v19 = vmov 6  }
  0x2b   :  { %1522 = vmatprep.subr.bf16.mxu1 %v2513_v6  ;;  %1681 = vmatprep.subr.bf16.mxu0 %v2522_v11  ;;  %v2525_v16 = vld [vmem:[#allocation2 + $0x34] ss:$8 sps:$4 sm:$0xff]   ;;  %v2530_v17 = vld [vmem:[#allocation2 + $0x320] ss:$8 sps:$4 sm:$0xff]   ;;  %v2527_v21 = vld [vmem:[#allocation2 + $0x30] ss:$8 sps:$4 sm:$0xff]  }
  0x2c   :  { %242 = vperm.xlu1 %2472, %v2984_v3   ;;  %86 = vperm.xlu0 %2471, %v2984_v3   ;;  %v2534_v18 = vld [vmem:[#allocation2 + $0x334] ss:$8 sps:$4 sm:$0xff]   ;;  %v2536_v22 = vld [vmem:[#allocation2 + $0x330] ss:$8 sps:$4 sm:$0xff]   ;;  %v2531_v23 = vld [vmem:[#allocation2 + $0x44] ss:$8 sps:$4 sm:$0xff]  }
  0x2d   :  { %v2997_v20 = vld [vmem:[%s3193_s0 + $0x10] sm:$0xff]  ;;  %v2540_v24 = vld [vmem:[#allocation2 + $0x344] ss:$8 sps:$4 sm:$0xff]   ;;  %v3004_v25 = vld [vmem:[%s3193_s0 + $0x18] sm:$0xff]  ;;  %v2906_v34 = vmov 3   ;;  %v2907_v39 = vmov 9  }
  0x2e   :  { %1523 = vmatpush1.bf16.msra.mxu1 %v2515_v9  ;;  %1682 = vmatpush1.bf16.msra.mxu0 %v2524_v12  ;;  %v2533_v26 = vld [vmem:[#allocation2 + $0x40] ss:$8 sps:$4 sm:$0xff]   ;;  %v2537_v27 = vld [vmem:[#allocation2 + $0x54] ss:$8 sps:$4 sm:$0xff]   ;;  %v2539_v30 = vld [vmem:[#allocation2 + $0x50] ss:$8 sps:$4 sm:$0xff]  }
  0x2f   :  { %1524 = vmatprep.subr.bf16.mxu1 %v2519_v10  ;;  %1683 = vmatprep.subr.bf16.mxu0 %v2528_v14  ;;  %v2542_v28 = vld [vmem:[#allocation2 + $0x340] ss:$8 sps:$4 sm:$0xff]   ;;  %v2546_v29 = vld [vmem:[#allocation2 + $0x354] ss:$8 sps:$4 sm:$0xff]   ;;  %v2543_v31 = vld [vmem:[#allocation2 + $0x64] ss:$8 sps:$4 sm:$0xff]  }
  0x30   :  { %2474 = vset.pattern.permute.xlu1 %v2904_v13  ;;  %2473 = vset.pattern.permute.xlu0 %v2904_v13  ;;  %v2548_v32 = vld [vmem:[#allocation2 + $0x350] ss:$8 sps:$4 sm:$0xff]   ;;  %v2552_v33 = vld [vmem:[#allocation2 + $0x364] ss:$8 sps:$4 sm:$0xff]   ;;  %v2545_v35 = vld [vmem:[#allocation2 + $0x60] ss:$8 sps:$4 sm:$0xff]  }
  0x31   :  { %60 = vperm.xlu1 %2474, %v2984_v3   ;;  %57 = vperm.xlu0 %2473, %v2977_v2   ;;  %v2549_v36 = vld [vmem:[#allocation2 + $0x74] ss:$8 sps:$4 sm:$0xff]   ;;  %v2554_v37 = vld [vmem:[#allocation2 + $0x360] ss:$8 sps:$4 sm:$0xff]   ;;  %v2551_v40 = vld [vmem:[#allocation2 + $0x70] ss:$8 sps:$4 sm:$0xff]  }
  0x32   :  { %1525 = vmatpush1.bf16.msra.mxu1 %v2521_v15  ;;  %1684 = vmatpush1.bf16.msra.mxu0 %v2530_v17  ;;  %v2558_v38 = vld [vmem:[#allocation2 + $0x374] ss:$8 sps:$4 sm:$0xff]   ;;  %v2555_v41 = vld [vmem:[#allocation2 + $0x84] ss:$8 sps:$4 sm:$0xff]   ;;  %v2560_v42 = vld [vmem:[#allocation2 + $0x370] ss:$8 sps:$4 sm:$0xff]  }
  0x33   :  { %1526 = vmatprep.subr.bf16.mxu1 %v2525_v16  ;;  %1685 = vmatprep.subr.bf16.mxu0 %v2534_v18  ;;  %v2564_v43 = vld [vmem:[#allocation2 + $0x384] ss:$8 sps:$4 sm:$0xff]   ;;  %v2908_v44 = vmov 8   ;;  %v2557_v45 = vld [vmem:[#allocation2 + $0x80] ss:$8 sps:$4 sm:$0xff]   ;;  %v2909_v54 = vmov 2  }
  0x34   :  { %v2561_v46 = vld [vmem:[#allocation2 + $0x94] ss:$8 sps:$4 sm:$0xff]   ;;  %v2566_v47 = vld [vmem:[#allocation2 + $0x380] ss:$8 sps:$4 sm:$0xff]   ;;  %v2563_v49 = vld [vmem:[#allocation2 + $0x90] ss:$8 sps:$4 sm:$0xff]  }
  0x35   :  { %2475 = vset.pattern.permute.xlu1 %v2905_v19  ;;  %2476 = vset.pattern.permute.xlu0 %v2905_v19  ;;  %v2570_v48 = vld [vmem:[#allocation2 + $0x394] ss:$8 sps:$4 sm:$0xff]   ;;  %v2567_v50 = vld [vmem:[#allocation2 + $0xa4] ss:$8 sps:$4 sm:$0xff]   ;;  %v2572_v51 = vld [vmem:[#allocation2 + $0x390] ss:$8 sps:$4 sm:$0xff]  }
  0x36   :  { %213 = vperm.xlu1 %2475, %v2977_v2   ;;  %216 = vperm.xlu0 %2476, %v2984_v3   ;;  %v2576_v52 = vld [vmem:[#allocation2 + $0x3a4] ss:$8 sps:$4 sm:$0xff]   ;;  %v2569_v53 = vld [vmem:[#allocation2 + $0xa0] ss:$8 sps:$4 sm:$0xff]   ;;  %v2573_v55 = vld [vmem:[#allocation2 + $0xb4] ss:$8 sps:$4 sm:$0xff]  }
  0x37   :  { %1527 = vmatpush1.bf16.msra.mxu1 %v2527_v21  ;;  %1686 = vmatpush1.bf16.msra.mxu0 %v2536_v22  ;;  %v2578_v56 = vld [vmem:[#allocation2 + $0x3a0] ss:$8 sps:$4 sm:$0xff]   ;;  %v2582_v57 = vld [vmem:[#allocation2 + $0x3b4] ss:$8 sps:$4 sm:$0xff]   ;;  %v2575_v58 = vld [vmem:[#allocation2 + $0xb0] ss:$8 sps:$4 sm:$0xff]   ;;  %v54_v22 = vlaneseq }
  0x38   :  { %1528 = vmatprep.subr.bf16.mxu1 %v2531_v23  ;;  %1687 = vmatprep.subr.bf16.mxu0 %v2540_v24  ;;  %v2579_v59 = vld [vmem:[#allocation2 + $0xc4] ss:$8 sps:$4 sm:$0xff]   ;;  %v2584_v60 = vld [vmem:[#allocation2 + $0x3b0] ss:$8 sps:$4 sm:$0xff]   ;;  %v2581_v62 = vld [vmem:[#allocation2 + $0xc0] ss:$8 sps:$4 sm:$0xff]  }
  0x39   :  { %v2588_v61 = vld [vmem:[#allocation2 + $0x3c4] ss:$8 sps:$4 sm:$0xff]   ;;  %v2585_v63 = vld [vmem:[#allocation2 + $0xd4] ss:$8 sps:$4 sm:$0xff]   ;;  %v2587_v5 = vld [vmem:[#allocation2 + $0xd0] ss:$8 sps:$4 sm:$0xff]  }
  0x3a   :  { %2477 = vset.pattern.permute.xlu1 %v2903_v1  ;;  %2478 = vset.pattern.permute.xlu0 %v2902_v0  ;;  %v2910_v1 = vmov 4   ;;  %v2594_v4 = vld [vmem:[#allocation2 + $0x3d4] ss:$8 sps:$4 sm:$0xff]   ;;  %v2591_v6 = vld [vmem:[#allocation2 + $0xe4] ss:$8 sps:$4 sm:$0xff]   ;;  %v2911_v9 = vmov 5  }
  0x3b   :  { %89 = vperm.xlu1 %2477, %v2997_v20   ;;  %245 = vperm.xlu0 %2478, %v2997_v20   ;;  %v2596_v7 = vld [vmem:[#allocation2 + $0x3d0] ss:$8 sps:$4 sm:$0xff]   ;;  %v2600_v8 = vld [vmem:[#allocation2 + $0x3e4] ss:$8 sps:$4 sm:$0xff]   ;;  %v2593_v10 = vld [vmem:[#allocation2 + $0xe0] ss:$8 sps:$4 sm:$0xff]  }
  0x3c   :  { %1529 = vmatpush1.bf16.msra.mxu1 %v2533_v26  ;;  %1688 = vmatpush1.bf16.msra.mxu0 %v2542_v28  ;;  %v2597_v11 = vld [vmem:[#allocation2 + $0xf4] ss:$8 sps:$4 sm:$0xff]   ;;  %v2602_v12 = vld [vmem:[#allocation2 + $0x3e0] ss:$8 sps:$4 sm:$0xff]   ;;  %v2599_v15 = vld [vmem:[#allocation2 + $0xf0] ss:$8 sps:$4 sm:$0xff]  }
  0x3d   :  { %1530 = vmatprep.subr.bf16.mxu1 %v2537_v27  ;;  %1689 = vmatprep.subr.bf16.mxu0 %v2546_v29  ;;  %v2606_v14 = vld [vmem:[#allocation2 + $0x3f4] ss:$8 sps:$4 sm:$0xff]   ;;  %v2912_v16 = vmov 11   ;;  %v2605_v17 = vld [vmem:[#allocation2 + $0x104] ss:$8 sps:$4 sm:$0xff]   ;;  %v2913_v21 = vmov 10  }
  0x3e   :  { %v2608_v18 = vld [vmem:[#allocation2 + $0x3f0] ss:$8 sps:$4 sm:$0xff]   ;;  %v3061_v26 = vand.u32 127, %v54_v22  ;;  %s2915_s0 = smov 64   ;;  %s2916_s25 = smov 96  }
  0x3f   :  { %92 = vperm.xlu1 %2477, %v3004_v25   ;;  %2481 = vset.pattern.permute.xlu0 %v2904_v13  ;;  %s2917_s26 = smov 32   ;;  %s2918_s30 = smov [#allocation7]  }
  0x40   :  { %66 = vperm.xlu0 %2481, %v3004_v25   ;;  %1531 = vmatpush1.bf16.msra.mxu1 %v2539_v30  ;;  %v2603_v30 = vld [vmem:[#allocation2 + $0x100] ss:$8 sps:$4 sm:$0xff]   ;;  %s2094_s6 = sshll.u32 %s2918_s30, 4  ;;  %s2095_s6 = int_to_ptr.vmem [resolvable:$true] %s2094_s6 }
  0x41   :  { %1532 = vmatprep.subr.bf16.mxu1 %v2543_v31  ;;  %1690 = vmatpush1.bf16.msra.mxu0 %v2548_v32  ;;  %v2611_v31 = vld [vmem:[#allocation2 + $0x114] ss:$8 sps:$4 sm:$0xff]   ;;  %p2875_p3 = scmp.lt.s32.totalorder %s2095_s6, %s2095_s6 }
  0x42   :  { %1691 = vmatprep.subr.bf16.mxu0 %v2552_v33 }
  0x43   :  { %2479 = vset.pattern.permute.xlu1 %v2902_v0  ;;  %v2590_v0 = vld [vmem:[#allocation2 + $0x3c0] ss:$8 sps:$4 sm:$0xff]  }
  0x44   :  { %248 = vperm.xlu1 %2479, %v3004_v25   ;;  %2483 = vset.pattern.permute.xlu0 %v2906_v34 }
  0x45   :  { %135 = vperm.xlu0 %2483, %v2977_v2   ;;  %1533 = vmatpush1.bf16.msra.mxu1 %v2545_v35  ;;  %v2617_v35 = vld [vmem:[#allocation2 + $0x124] ss:$8 sps:$4 sm:$0xff]  }
  0x46   :  { %1534 = vmatprep.subr.bf16.mxu1 %v2549_v36  ;;  %1692 = vmatpush1.bf16.msra.mxu0 %v2554_v37  ;;  %v2620_v36 = vld [vmem:[#allocation2 + $0x414] ss:$8 sps:$4 sm:$0xff]   ;;  %v2615_v37 = vld [vmem:[#allocation2 + $0x120] ss:$8 sps:$4 sm:$0xff]  }
  0x47   :  { %1693 = vmatprep.subr.bf16.mxu0 %v2558_v38  ;;  %v2618_v38 = vld [vmem:[#allocation2 + $0x410] ss:$8 sps:$4 sm:$0xff]  }
  0x48   :  { %2480 = vset.pattern.permute.xlu1 %v2904_v13 }
  0x49   :  { %63 = vperm.xlu1 %2480, %v2997_v20   ;;  %2486 = vset.pattern.permute.xlu0 %v2907_v39 }
  0x4a   :  { %294 = vperm.xlu0 %2486, %v2984_v3   ;;  %1535 = vmatpush1.bf16.msra.mxu1 %v2551_v40 }
  0x4b   :  { %1536 = vmatprep.subr.bf16.mxu1 %v2555_v41  ;;  %1694 = vmatpush1.bf16.msra.mxu0 %v2560_v42  ;;  %v2626_v41 = vld [vmem:[#allocation2 + $0x424] ss:$8 sps:$4 sm:$0xff]   ;;  %v2621_v42 = vld [vmem:[#allocation2 + $0x130] ss:$8 sps:$4 sm:$0xff]  }
  0x4c   :  { %1695 = vmatprep.subr.bf16.mxu0 %v2564_v43  ;;  %v2624_v43 = vld [vmem:[#allocation2 + $0x420] ss:$8 sps:$4 sm:$0xff]  }
  0x4d   :  { %2482 = vset.pattern.permute.xlu1 %v2905_v19  ;;  %v2614_v19 = vld [vmem:[#allocation2 + $0x404] ss:$8 sps:$4 sm:$0xff]  }
  0x4e   :  { %219 = vperm.xlu1 %2482, %v2997_v20   ;;  %2488 = vset.pattern.permute.xlu0 %v2908_v44 }
  0x4f   :  { %265 = vperm.xlu0 %2488, %v2977_v2   ;;  %1537 = vmatpush1.bf16.msra.mxu1 %v2557_v45  ;;  %v2632_v45 = vld [vmem:[#allocation2 + $0x434] ss:$8 sps:$4 sm:$0xff]  }
  0x50   :  { %1538 = vmatprep.subr.bf16.mxu1 %v2561_v46  ;;  %1696 = vmatpush1.bf16.msra.mxu0 %v2566_v47  ;;  %v2627_v47 = vld [vmem:[#allocation2 + $0x140] ss:$8 sps:$4 sm:$0xff]  }
  0x51   :  { %1697 = vmatprep.subr.bf16.mxu0 %v2570_v48  ;;  %v2630_v48 = vld [vmem:[#allocation2 + $0x430] ss:$8 sps:$4 sm:$0xff]  }
  0x52   :  { %222 = vperm.xlu1 %2482, %v3004_v25  }
  0x53   :  { %2491 = vset.pattern.permute.xlu0 %v2906_v34  ;;  %1539 = vmatpush1.bf16.msra.mxu1 %v2563_v49  ;;  %v2635_v49 = vld [vmem:[#allocation2 + $0x154] ss:$8 sps:$4 sm:$0xff]  }
  0x54   :  { %144 = vperm.xlu0 %2491, %v3004_v25   ;;  %1540 = vmatprep.subr.bf16.mxu1 %v2567_v50  ;;  %v2638_v50 = vld [vmem:[#allocation2 + $0x444] ss:$8 sps:$4 sm:$0xff]  }
  0x55   :  { %1698 = vmatpush1.bf16.msra.mxu0 %v2572_v51 }
  0x56   :  { %2484 = vset.pattern.permute.xlu1 %v2906_v34  ;;  %1699 = vmatprep.subr.bf16.mxu0 %v2576_v52  ;;  %v2633_v52 = vld [vmem:[#allocation2 + $0x150] ss:$8 sps:$4 sm:$0xff]  }
  0x57   :  { %138 = vperm.xlu1 %2484, %v2984_v3   ;;  %1541 = vmatpush1.bf16.msra.mxu1 %v2569_v53 }
  0x58   :  { %2493 = vset.pattern.permute.xlu0 %v2909_v54  ;;  %1542 = vmatprep.subr.bf16.mxu1 %v2573_v55  ;;  %v2641_v55 = vld [vmem:[#allocation2 + $0x164] ss:$8 sps:$4 sm:$0xff]  }
  0x59   :  { %115 = vperm.xlu0 %2493, %v2997_v20   ;;  %1700 = vmatpush1.bf16.msra.mxu0 %v2578_v56  ;;  %v2644_v56 = vld [vmem:[#allocation2 + $0x454] ss:$8 sps:$4 sm:$0xff]  }
  0x5a   :  { %1701 = vmatprep.subr.bf16.mxu0 %v2582_v57  ;;  %v2639_v57 = vld [vmem:[#allocation2 + $0x160] ss:$8 sps:$4 sm:$0xff]  }
  0x5b   :  { %2485 = vset.pattern.permute.xlu1 %v2907_v39  ;;  %1543 = vmatpush1.bf16.msra.mxu1 %v2575_v58 }
  0x5c   :  { %291 = vperm.xlu1 %2485, %v2977_v2   ;;  %1544 = vmatprep.subr.bf16.mxu1 %v2579_v59  ;;  %v2642_v59 = vld [vmem:[#allocation2 + $0x450] ss:$8 sps:$4 sm:$0xff]  }
  0x5d   :  { %2496 = vset.pattern.permute.xlu0 %v2908_v44  ;;  %1702 = vmatpush1.bf16.msra.mxu0 %v2584_v60  ;;  %v2647_v60 = vld [vmem:[#allocation2 + $0x174] ss:$8 sps:$4 sm:$0xff]  }
  0x5e   :  { %274 = vperm.xlu0 %2496, %v3004_v25   ;;  %1703 = vmatprep.subr.bf16.mxu0 %v2588_v61  ;;  %v2650_v61 = vld [vmem:[#allocation2 + $0x464] ss:$8 sps:$4 sm:$0xff]  }
  0x5f   :  { %1545 = vmatpush1.bf16.msra.mxu1 %v2581_v62  ;;  %v2645_v62 = vld [vmem:[#allocation2 + $0x170] ss:$8 sps:$4 sm:$0xff]  }
  0x60   :  { %2487 = vset.pattern.permute.xlu1 %v2909_v54  ;;  %1546 = vmatprep.subr.bf16.mxu1 %v2585_v63  ;;  %v2648_v63 = vld [vmem:[#allocation2 + $0x460] ss:$8 sps:$4 sm:$0xff]  }
  0x61   :  { %109 = vperm.xlu1 %2487, %v2977_v2   ;;  %1704 = vmatpush1.bf16.msra.mxu0 %v2590_v0 }
  0x62   :  { %2500 = vset.pattern.permute.xlu0 %v2910_v1  ;;  %1705 = vmatprep.subr.bf16.mxu0 %v2594_v4  ;;  %v2656_v4 = vld [vmem:[#allocation2 + $0x474] ss:$8 sps:$4 sm:$0xff]  }
  0x63   :  { %164 = vperm.xlu0 %2500, %v2984_v3   ;;  %1547 = vmatpush1.bf16.msra.mxu1 %v2587_v5  ;;  %v2651_v5 = vld [vmem:[#allocation2 + $0x180] ss:$8 sps:$4 sm:$0xff]  }
  0x64   :  { %1548 = vmatprep.subr.bf16.mxu1 %v2591_v6  ;;  %v2654_v6 = vld [vmem:[#allocation2 + $0x470] ss:$8 sps:$4 sm:$0xff]  }
  0x65   :  { %112 = vperm.xlu1 %2487, %v2984_v3   ;;  %1706 = vmatpush1.bf16.msra.mxu0 %v2596_v7 }
  0x66   :  { %1707 = vmatprep.subr.bf16.mxu0 %v2600_v8  ;;  %v2659_v8 = vld [vmem:[#allocation2 + $0x194] ss:$8 sps:$4 sm:$0xff]  }
  0x67   :  { %2502 = vset.pattern.permute.xlu0 %v2911_v9  ;;  %1549 = vmatpush1.bf16.msra.mxu1 %v2593_v10  ;;  %v2662_v10 = vld [vmem:[#allocation2 + $0x484] ss:$8 sps:$4 sm:$0xff]  }
  0x68   :  { %193 = vperm.xlu0 %2502, %v2997_v20   ;;  %1550 = vmatprep.subr.bf16.mxu1 %v2597_v11  ;;  %v2657_v11 = vld [vmem:[#allocation2 + $0x190] ss:$8 sps:$4 sm:$0xff]  }
  0x69   :  { %2489 = vset.pattern.permute.xlu1 %v2908_v44  ;;  %1708 = vmatpush1.bf16.msra.mxu0 %v2602_v12  ;;  %v2660_v12 = vld [vmem:[#allocation2 + $0x480] ss:$8 sps:$4 sm:$0xff]  }
  0x6a   :  { %268 = vperm.xlu1 %2489, %v2984_v3   ;;  %1709 = vmatprep.subr.bf16.mxu0 %v2606_v14  ;;  %v2665_v14 = vld [vmem:[#allocation2 + $0x1a4] ss:$8 sps:$4 sm:$0xff]  }
  0x6b   :  { %1551 = vmatpush1.bf16.msra.mxu1 %v2599_v15  ;;  %v2668_v15 = vld [vmem:[#allocation2 + $0x494] ss:$8 sps:$4 sm:$0xff]  }
  0x6c   :  { %2503 = vset.pattern.permute.xlu0 %v2912_v16  ;;  %1573 = vmatprep.subr.bf16.mxu1 %v2605_v17 }
  0x6d   :  { %343 = vperm.xlu0 %2503, %v2977_v2   ;;  %1710 = vmatpush1.bf16.msra.mxu0 %v2608_v18  ;;  %v2663_v18 = vld [vmem:[#allocation2 + $0x1a0] ss:$8 sps:$4 sm:$0xff]  }
  0x6e   :  { %2490 = vset.pattern.permute.xlu1 %v2906_v34  ;;  %1732 = vmatprep.subr.bf16.mxu0 %v2614_v19  ;;  %v2612_v34 = vld [vmem:[#allocation2 + $0x400] ss:$8 sps:$4 sm:$0xff]   ;;  %v2666_v19 = vld [vmem:[#allocation2 + $0x490] ss:$8 sps:$4 sm:$0xff]  }
  0x6f   :  { %141 = vperm.xlu1 %2490, %v2997_v20  }
  0x71   :  { %352 = vperm.xlu0 %2503, %v3004_v25  }
  0x73   :  { %2492 = vset.pattern.permute.xlu1 %v2907_v39  ;;  %v2623_v39 = vld [vmem:[#allocation2 + $0x134] ss:$8 sps:$4 sm:$0xff]  }
  0x74   :  { %297 = vperm.xlu1 %2492, %v2997_v20  }
  0x75   :  { %2507 = vset.pattern.permute.xlu0 %v2913_v21 }
  0x76   :  { %323 = vperm.xlu0 %2507, %v2997_v20  }
  0x78   :  { %300 = vperm.xlu1 %2492, %v3004_v25  }
  0x7a   :  { %2509 = vset.pattern.permute.xlu0 %v2912_v16 }
  0x7c   :  { %2494 = vset.pattern.permute.xlu1 %v2909_v54  ;;  %v2636_v54 = vld [vmem:[#allocation2 + $0x440] ss:$8 sps:$4 sm:$0xff]  }
  0x7d   :  { %118 = vperm.xlu1 %2494, %v3004_v25  }
  0x81   :  { %2495 = vset.pattern.permute.xlu1 %v2908_v44 }
  0x82   :  { %271 = vperm.xlu1 %2495, %v2997_v20  }
  0x86   :  { %2497 = vset.pattern.permute.xlu1 %v2911_v9 }
  0x87   :  { %187 = vperm.xlu1 %2497, %v2977_v2  }
  0x8b   :  { %190 = vperm.xlu1 %2497, %v2984_v3  }
  0x8f   :  { %2498 = vset.pattern.permute.xlu1 %v2912_v16 }
  0x90   :  { %346 = vperm.xlu1 %2498, %v2984_v3  }
  0x94   :  { %2499 = vset.pattern.permute.xlu1 %v2910_v1 }
  0x95   :  { %161 = vperm.xlu1 %2499, %v2977_v2  }
  0x99   :  { %2501 = vset.pattern.permute.xlu1 %v2913_v21 }
  0x9a   :  { %317 = vperm.xlu1 %2501, %v2977_v2   ;;  %v2914_v2 = vmov 1.0|1.0  }
  0x9e   :  { %320 = vperm.xlu1 %2501, %v2984_v3  }
  0xa2   :  { %2504 = vset.pattern.permute.xlu1 %v2911_v9 }
  0xa3   :  { %196 = vperm.xlu1 %2504, %v3004_v25  }
  0xa7   :  { %v240_v23 = vpop.permute.xlu1 %239  ;;  %v84_v24 = vpop.permute.xlu0 %83  ;;  %2505 = vset.pattern.permute.xlu1 %v2912_v16 }
  0xa8   :  { %349 = vperm.xlu1 %2505, %v2997_v20   ;;  %vm94_vm0 = vcmp.eq.s32.totalorder %v84_v24, %v3061_v26  ;;  %vm250_vm3 = vcmp.eq.s32.totalorder %v240_v23, %v3061_v26  ;;  %v2674_v23 = vld [vmem:[#allocation2 + $0x4a4] ss:$8 sps:$4 sm:$0xff]  }
  0xab   :  { %v243_v27 = vpop.permute.xlu1 %242  ;;  %v87_v28 = vpop.permute.xlu0 %86 }
  0xac   :  { %vm251_vm1 = vcmp.eq.s32.totalorder %v243_v27, %v3061_v26  ;;  %vm95_vm2 = vcmp.eq.s32.totalorder %v87_v28, %v3061_v26  ;;  %2506 = vset.pattern.permute.xlu1 %v2910_v1  ;;  %v2653_v1 = vld [vmem:[#allocation2 + $0x184] ss:$8 sps:$4 sm:$0xff]   ;;  %v2669_v27 = vld [vmem:[#allocation2 + $0x1b0] ss:$8 sps:$4 sm:$0xff]   ;;  %v2672_v28 = vld [vmem:[#allocation2 + $0x4a0] ss:$8 sps:$4 sm:$0xff]  }
  0xad   :  { %vm2344_vm4 = vmpackc.low %vm95_vm2, %vm94_vm0  ;;  %167 = vperm.xlu1 %2506, %v2997_v20   ;;  %v2609_v20 = vld [vmem:[#allocation2 + $0x110] ss:$8 sps:$4 sm:$0xff]  }
  0xae   :  { %2345 = vmatprep.mubr.msk.bf16.mxu1 %vm2344_vm4, %v2914_v2  ;;  %vm2368_vm5 = vmpackc.low %vm251_vm1, %vm250_vm3 }
  0xaf   :  { %2369 = vmatprep.mubr.msk.bf16.mxu0 %vm2368_vm5, %v2914_v2 }
  0xb0   :  { %v61_v3 = vpop.permute.xlu1 %60  ;;  %v58_v29 = vpop.permute.xlu0 %57 }
  0xb1   :  { %vm69_vm6 = vcmp.eq.s32.totalorder %v61_v3, %v3061_v26  ;;  %vm68_vm7 = vcmp.eq.s32.totalorder %v58_v29, %v3061_v26  ;;  %170 = vperm.xlu1 %2506, %v3004_v25   ;;  %v2677_v3 = vld [vmem:[#allocation2 + $0x1c4] ss:$8 sps:$4 sm:$0xff]   ;;  %v2680_v29 = vld [vmem:[#allocation2 + $0x4b4] ss:$8 sps:$4 sm:$0xff]  }
  0xb2   :  { %vm2346_vm8 = vmpackc.low %vm69_vm6, %vm68_vm7 }
  0xb3   :  { %2347 = vmatmul.mubr.msk.bf16.vlgmr.msra.gmra.mrb[0].mxu1 %vm2346_vm8, %v2914_v2 }
  0xb4   :  { %1574 = vmatpush1.bf16.msra.mxu1 %v2603_v30  ;;  %v2675_v30 = vld [vmem:[#allocation2 + $0x1c0] ss:$8 sps:$4 sm:$0xff]  }
  0xb5   :  { %v214_v32 = vpop.permute.xlu1 %213  ;;  %v217_v33 = vpop.permute.xlu0 %216  ;;  %1575 = vmatprep.subr.bf16.mxu1 %v2611_v31  ;;  %2508 = vset.pattern.permute.xlu1 %v2913_v21  ;;  %v2671_v21 = vld [vmem:[#allocation2 + $0x1b4] ss:$8 sps:$4 sm:$0xff]  }
  0xb6   :  { %vm224_vm9 = vcmp.eq.s32.totalorder %v214_v32, %v3061_v26  ;;  %vm225_vm10 = vcmp.eq.s32.totalorder %v217_v33, %v3061_v26  ;;  %326 = vperm.xlu1 %2508, %v3004_v25   ;;  %v2629_v25 = vld [vmem:[#allocation2 + $0x144] ss:$8 sps:$4 sm:$0xff]   ;;  %v2683_v32 = vld [vmem:[#allocation2 + $0x1d4] ss:$8 sps:$4 sm:$0xff]  }
  0xb7   :  { %vm2370_vm11 = vmpackc.low %vm225_vm10, %vm224_vm9  ;;  %v2686_v33 = vld [vmem:[#allocation2 + $0x4c4] ss:$8 sps:$4 sm:$0xff]  }
  0xb8   :  { %1576 = vmatpush1.bf16.msra.mxu1 %v2609_v20  ;;  %2371 = vmatmul.mubr.msk.bf16.vlgmr.msra.gmra.mrb[0].mxu0 %vm2370_vm11, %v2914_v2  ;;  %v2678_v20 = vld [vmem:[#allocation2 + $0x4b0] ss:$8 sps:$4 sm:$0xff]  }
  0xb9   :  { %1733 = vmatpush1.bf16.msra.mxu0 %v2612_v34  ;;  %1577 = vmatprep.subr.bf16.mxu1 %v2617_v35  ;;  %v2681_v34 = vld [vmem:[#allocation2 + $0x1d0] ss:$8 sps:$4 sm:$0xff]   ;;  %v2684_v35 = vld [vmem:[#allocation2 + $0x4c0] ss:$8 sps:$4 sm:$0xff]  }
  0xba   :  { %1734 = vmatprep.subr.bf16.mxu0 %v2620_v36  ;;  %v90_v40 = vpop.permute.xlu1 %89  ;;  %v246_v46 = vpop.permute.xlu0 %245 }
  0xbb   :  { %vm96_vm12 = vcmp.eq.s32.totalorder %v90_v40, %v3061_v26  ;;  %vm252_vm15 = vcmp.eq.s32.totalorder %v246_v46, %v3061_v26  ;;  %v2687_v40 = vld [vmem:[#allocation2 + $0x1e0] ss:$8 sps:$4 sm:$0xff]  }
  0xbc   :  { %1578 = vmatpush1.bf16.msra.mxu1 %v2615_v37  ;;  %v2689_v37 = vld [vmem:[#allocation2 + $0x1e4] ss:$8 sps:$4 sm:$0xff]   ;;  %v2696_v46 = vld [vmem:[#allocation2 + $0x4e0] ss:$8 sps:$4 sm:$0xff]  }
  0xbd   :  { %1735 = vmatpush1.bf16.msra.mxu0 %v2618_v38  ;;  %1579 = vmatprep.subr.bf16.mxu1 %v2623_v39  ;;  %v2692_v39 = vld [vmem:[#allocation2 + $0x4d4] ss:$8 sps:$4 sm:$0xff]  }
  0xbe   :  { %1736 = vmatprep.subr.bf16.mxu0 %v2626_v41  ;;  %v93_v44 = vpop.permute.xlu1 %92  ;;  %v2690_v41 = vld [vmem:[#allocation2 + $0x4d0] ss:$8 sps:$4 sm:$0xff]  }
  0xbf   :  { %vm97_vm13 = vcmp.eq.s32.totalorder %v93_v44, %v3061_v26  ;;  %v67_v53 = vpop.permute.xlu0 %66 }
  0xc0   :  { %1580 = vmatpush1.bf16.msra.mxu1 %v2621_v42  ;;  %vm2348_vm14 = vmpackc.low %vm97_vm13, %vm96_vm12  ;;  %vm71_vm2 = vcmp.eq.s32.totalorder %v67_v53, %v3061_v26  ;;  %v2695_v42 = vld [vmem:[#allocation2 + $0x1f4] ss:$8 sps:$4 sm:$0xff]   ;;  %v2710_v53 = vld [vmem:[#allocation2 + $0x504] ss:$8 sps:$4 sm:$0xff]  }
  0xc1   :  { %1737 = vmatpush1.bf16.msra.mxu0 %v2624_v43  ;;  %1581 = vmatprep.subr.bf16.mxu1 %v2629_v25  ;;  %v2698_v25 = vld [vmem:[#allocation2 + $0x4e4] ss:$8 sps:$4 sm:$0xff]  }
  0xc2   :  { %1738 = vmatprep.subr.bf16.mxu0 %v2632_v45  ;;  %2349 = vmatprep.mubr.msk.bf16.mxu1 %vm2348_vm14, %v2914_v2  ;;  %v2693_v45 = vld [vmem:[#allocation2 + $0x1f0] ss:$8 sps:$4 sm:$0xff]  }
  0xc3   :  { %v249_v51 = vpop.permute.xlu1 %248 }
  0xc4   :  { %1582 = vmatpush1.bf16.msra.mxu1 %v2627_v47  ;;  %vm253_vm0 = vcmp.eq.s32.totalorder %v249_v51, %v3061_v26  ;;  %v136_v9 = vpop.permute.xlu0 %135  ;;  %v2701_v47 = vld [vmem:[#allocation2 + $0x204] ss:$8 sps:$4 sm:$0xff]   ;;  %v2702_v51 = vld [vmem:[#allocation2 + $0x4f0] ss:$8 sps:$4 sm:$0xff]  }
  0xc5   :  { %1739 = vmatpush1.bf16.msra.mxu0 %v2630_v48  ;;  %1583 = vmatprep.subr.bf16.mxu1 %v2635_v49  ;;  %vm2372_vm1 = vmpackc.low %vm253_vm0, %vm252_vm15  ;;  %vm146_vm8 = vcmp.eq.s32.totalorder %v136_v9, %v3061_v26  ;;  %v2704_v49 = vld [vmem:[#allocation2 + $0x4f4] ss:$8 sps:$4 sm:$0xff]  }
  0xc6   :  { %1740 = vmatprep.subr.bf16.mxu0 %v2638_v50  ;;  %2373 = vmatprep.mubr.msk.bf16.mxu0 %vm2372_vm1, %v2914_v2  ;;  %v2699_v50 = vld [vmem:[#allocation2 + $0x200] ss:$8 sps:$4 sm:$0xff]  }
  0xc8   :  { %1584 = vmatpush1.bf16.msra.mxu1 %v2633_v52  ;;  %v64_v58 = vpop.permute.xlu1 %63  ;;  %v2707_v52 = vld [vmem:[#allocation2 + $0x214] ss:$8 sps:$4 sm:$0xff]  }
  0xc9   :  { %1741 = vmatpush1.bf16.msra.mxu0 %v2636_v54  ;;  %1585 = vmatprep.subr.bf16.mxu1 %v2641_v55  ;;  %vm70_vm3 = vcmp.eq.s32.totalorder %v64_v58, %v3061_v26  ;;  %v295_v17 = vpop.permute.xlu0 %294  ;;  %v2705_v55 = vld [vmem:[#allocation2 + $0x210] ss:$8 sps:$4 sm:$0xff]  }
  0xca   :  { %1742 = vmatprep.subr.bf16.mxu0 %v2644_v56  ;;  %vm2350_vm4 = vmpackc.low %vm71_vm2, %vm70_vm3  ;;  %vm303_vm11 = vcmp.eq.s32.totalorder %v295_v17, %v3061_v26  ;;  %v2708_v56 = vld [vmem:[#allocation2 + $0x500] ss:$8 sps:$4 sm:$0xff]  }
  0xcb   :  { %2351 = vmatmul.mubr.msk.bf16.gmra.mrb[4].mxu1 %vm2350_vm4, %v2914_v2  ;;  %v2732_v17 = vld [vmem:[#allocation2 + $0x540] ss:$8 sps:$4 sm:$0xff]  }
  0xcc   :  { %1586 = vmatpush1.bf16.msra.mxu1 %v2639_v57  ;;  %v2713_v57 = vld [vmem:[#allocation2 + $0x224] ss:$8 sps:$4 sm:$0xff]  }
  0xcd   :  { %1743 = vmatpush1.bf16.msra.mxu0 %v2642_v59  ;;  %1587 = vmatprep.subr.bf16.mxu1 %v2647_v60  ;;  %v220_v0 = vpop.permute.xlu1 %219  ;;  %v2716_v59 = vld [vmem:[#allocation2 + $0x514] ss:$8 sps:$4 sm:$0xff]  }
  0xce   :  { %1744 = vmatprep.subr.bf16.mxu0 %v2650_v61  ;;  %vm226_vm5 = vcmp.eq.s32.totalorder %v220_v0, %v3061_v26  ;;  %v266_v38 = vpop.permute.xlu0 %265  ;;  %v2711_v61 = vld [vmem:[#allocation2 + $0x220] ss:$8 sps:$4 sm:$0xff]   ;;  %v2722_v0 = vld [vmem:[#allocation2 + $0x524] ss:$8 sps:$4 sm:$0xff]  }
  0xd0   :  { %1588 = vmatpush1.bf16.msra.mxu1 %v2645_v62  ;;  %v2714_v62 = vld [vmem:[#allocation2 + $0x510] ss:$8 sps:$4 sm:$0xff]  }
  0xd1   :  { %1745 = vmatpush1.bf16.msra.mxu0 %v2648_v63  ;;  %1589 = vmatprep.subr.bf16.mxu1 %v2653_v1  ;;  %v223_v7 = vpop.permute.xlu1 %222  ;;  %v2719_v63 = vld [vmem:[#allocation2 + $0x234] ss:$8 sps:$4 sm:$0xff]  }
  0xd2   :  { %1746 = vmatprep.subr.bf16.mxu0 %v2656_v4  ;;  %vm227_vm6 = vcmp.eq.s32.totalorder %v223_v7, %v3061_v26  ;;  %v2717_v4 = vld [vmem:[#allocation2 + $0x230] ss:$8 sps:$4 sm:$0xff]   ;;  %v2725_v7 = vld [vmem:[#allocation2 + $0x244] ss:$8 sps:$4 sm:$0xff]  }
  0xd3   :  { %vm2374_vm7 = vmpackc.low %vm227_vm6, %vm226_vm5  ;;  %v145_v44 = vpop.permute.xlu0 %144  ;;  %vm276_vm5 = vcmp.eq.s32.totalorder %v266_v38, %v3061_v26  ;;  %v2758_v38 = vld [vmem:[#allocation2 + $0x584] ss:$8 sps:$4 sm:$0xff]  }
  0xd4   :  { %1590 = vmatpush1.bf16.msra.mxu1 %v2651_v5  ;;  %2375 = vmatmul.mubr.msk.bf16.gmra.mrb[4].mxu0 %vm2374_vm7, %v2914_v2  ;;  %vm149_vm14 = vcmp.eq.s32.totalorder %v145_v44, %v3061_v26  ;;  %v2762_v44 = vld [vmem:[#allocation2 + $0x590] ss:$8 sps:$4 sm:$0xff]  }
  0xd5   :  { %1747 = vmatpush1.bf16.msra.mxu0 %v2654_v6  ;;  %1591 = vmatprep.subr.bf16.mxu1 %v2659_v8  ;;  %v2720_v6 = vld [vmem:[#allocation2 + $0x520] ss:$8 sps:$4 sm:$0xff]   ;;  %v2728_v8 = vld [vmem:[#allocation2 + $0x534] ss:$8 sps:$4 sm:$0xff]  }
  0xd6   :  { %1748 = vmatprep.subr.bf16.mxu0 %v2662_v10  ;;  %v139_v16 = vpop.permute.xlu1 %138  ;;  %v2723_v10 = vld [vmem:[#allocation2 + $0x240] ss:$8 sps:$4 sm:$0xff]  }
  0xd7   :  { %vm147_vm9 = vcmp.eq.s32.totalorder %v139_v16, %v3061_v26  ;;  %v2729_v16 = vld [vmem:[#allocation2 + $0x250] ss:$8 sps:$4 sm:$0xff]  }
  0xd8   :  { %1592 = vmatpush1.bf16.msra.mxu1 %v2657_v11  ;;  %vm2352_vm10 = vmpackc.low %vm147_vm9, %vm146_vm8  ;;  %v116_v58 = vpop.permute.xlu0 %115  ;;  %v2726_v11 = vld [vmem:[#allocation2 + $0x530] ss:$8 sps:$4 sm:$0xff]  }
  0xd9   :  { %1749 = vmatpush1.bf16.msra.mxu0 %v2660_v12  ;;  %1593 = vmatprep.subr.bf16.mxu1 %v2665_v14  ;;  %v2731_v14 = vld [vmem:[#allocation2 + $0x254] ss:$8 sps:$4 sm:$0xff]  }
  0xda   :  { %1750 = vmatprep.subr.bf16.mxu0 %v2668_v15  ;;  %2353 = vmatprep.mubr.msk.bf16.mxu1 %vm2352_vm10, %v2914_v2  ;;  %vm122_vm10 = vcmp.eq.s32.totalorder %v116_v58, %v3061_v26  ;;  %v2734_v15 = vld [vmem:[#allocation2 + $0x544] ss:$8 sps:$4 sm:$0xff]   ;;  %v2777_v58 = vld [vmem:[#allocation2 + $0x2d0] ss:$8 sps:$4 sm:$0xff]  }
  0xdb   :  { %v292_v24 = vpop.permute.xlu1 %291 }
  0xdc   :  { %1594 = vmatpush1.bf16.msra.mxu1 %v2663_v18  ;;  %vm302_vm12 = vcmp.eq.s32.totalorder %v292_v24, %v3061_v26  ;;  %v2737_v18 = vld [vmem:[#allocation2 + $0x264] ss:$8 sps:$4 sm:$0xff]   ;;  %v2735_v24 = vld [vmem:[#allocation2 + $0x260] ss:$8 sps:$4 sm:$0xff]  }
  0xdd   :  { %1751 = vmatpush1.bf16.msra.mxu0 %v2666_v19  ;;  %1595 = vmatprep.subr.bf16.mxu1 %v2671_v21  ;;  %vm2376_vm13 = vmpackc.low %vm303_vm11, %vm302_vm12  ;;  %v275_v1 = vpop.permute.xlu0 %274 }
  0xde   :  { %1752 = vmatprep.subr.bf16.mxu0 %v2674_v23  ;;  %2377 = vmatprep.mubr.msk.bf16.mxu0 %vm2376_vm13, %v2914_v2  ;;  %vm279_vm13 = vcmp.eq.s32.totalorder %v275_v1, %v3061_v26  ;;  %v2740_v23 = vld [vmem:[#allocation2 + $0x554] ss:$8 sps:$4 sm:$0xff]  }
  0xdf   :  { %v2791_v1 = vld [vmem:[#allocation2 + $0x2f4] ss:$8 sps:$4 sm:$0xff]  }
  0xe0   :  { %1596 = vmatpush1.bf16.msra.mxu1 %v2669_v27  ;;  %v110_v31 = vpop.permute.xlu1 %109  ;;  %v2738_v27 = vld [vmem:[#allocation2 + $0x550] ss:$8 sps:$4 sm:$0xff]  }
  0xe1   :  { %1753 = vmatpush1.bf16.msra.mxu0 %v2672_v28  ;;  %1597 = vmatprep.subr.bf16.mxu1 %v2677_v3  ;;  %vm120_vm15 = vcmp.eq.s32.totalorder %v110_v31, %v3061_v26  ;;  %v2743_v28 = vld [vmem:[#allocation2 + $0x274] ss:$8 sps:$4 sm:$0xff]   ;;  %v2741_v31 = vld [vmem:[#allocation2 + $0x270] ss:$8 sps:$4 sm:$0xff]  }
  0xe2   :  { %1754 = vmatprep.subr.bf16.mxu0 %v2680_v29  ;;  %v3113_v9 = vpop.permute.xlu0 %164  ;;  %v2746_v29 = vld [vmem:[#allocation2 + $0x564] ss:$8 sps:$4 sm:$0xff]  }
  0xe4   :  { %1598 = vmatpush1.bf16.msra.mxu1 %v2675_v30  ;;  %v113_v36 = vpop.permute.xlu1 %112 }
  0xe5   :  { %1755 = vmatpush1.bf16.msra.mxu0 %v2678_v20  ;;  %1599 = vmatprep.subr.bf16.mxu1 %v2683_v32  ;;  %vm121_vm0 = vcmp.eq.s32.totalorder %v113_v36, %v3061_v26  ;;  %v2744_v20 = vld [vmem:[#allocation2 + $0x560] ss:$8 sps:$4 sm:$0xff]   ;;  %v2749_v32 = vld [vmem:[#allocation2 + $0x284] ss:$8 sps:$4 sm:$0xff]   ;;  %v2750_v36 = vld [vmem:[#allocation2 + $0x570] ss:$8 sps:$4 sm:$0xff]  }
  0xe6   :  { %1756 = vmatprep.subr.bf16.mxu0 %v2686_v33  ;;  %vm2354_vm3 = vmpackc.low %vm121_vm0, %vm120_vm15  ;;  %v2752_v33 = vld [vmem:[#allocation2 + $0x574] ss:$8 sps:$4 sm:$0xff]  }
  0xe7   :  { %v3118_v19 = vpop.permute.xlu0 %193 }
  0xe8   :  { %1600 = vmatpush1.bf16.msra.mxu1 %v2681_v34 }
  0xe9   :  { %1757 = vmatpush1.bf16.msra.mxu0 %v2684_v35  ;;  %1601 = vmatprep.subr.bf16.mxu1 %v2689_v37  ;;  %v269_v43 = vpop.permute.xlu1 %268  ;;  %v2747_v35 = vld [vmem:[#allocation2 + $0x280] ss:$8 sps:$4 sm:$0xff]   ;;  %v2755_v37 = vld [vmem:[#allocation2 + $0x294] ss:$8 sps:$4 sm:$0xff]  }
  0xea   :  { %1758 = vmatprep.subr.bf16.mxu0 %v2692_v39  ;;  %vm277_vm4 = vcmp.eq.s32.totalorder %v269_v43, %v3061_v26  ;;  %v2753_v39 = vld [vmem:[#allocation2 + $0x290] ss:$8 sps:$4 sm:$0xff]   ;;  %v2764_v43 = vld [vmem:[#allocation2 + $0x594] ss:$8 sps:$4 sm:$0xff]  }
  0xeb   :  { %vm2378_vm7 = vmpackc.low %vm277_vm4, %vm276_vm5 }
  0xec   :  { %1602 = vmatpush1.bf16.msra.mxu1 %v2687_v40  ;;  %v344_v30 = vpop.permute.xlu0 %343 }
  0xed   :  { %1759 = vmatpush1.bf16.msra.mxu0 %v2690_v41  ;;  %1603 = vmatprep.subr.bf16.mxu1 %v2695_v42  ;;  %v2756_v41 = vld [vmem:[#allocation2 + $0x580] ss:$8 sps:$4 sm:$0xff]   ;;  %v2761_v42 = vld [vmem:[#allocation2 + $0x2a4] ss:$8 sps:$4 sm:$0xff]  }
  0xee   :  { %1760 = vmatprep.subr.bf16.mxu0 %v2698_v25  ;;  %v142_v48 = vpop.permute.xlu1 %141  ;;  %v2759_v25 = vld [vmem:[#allocation2 + $0x2a0] ss:$8 sps:$4 sm:$0xff]  }
  0xef   :  { %vm148_vm1 = vcmp.eq.s32.totalorder %v142_v48, %v3061_v26  ;;  %v2765_v48 = vld [vmem:[#allocation2 + $0x2b0] ss:$8 sps:$4 sm:$0xff]  }
  0xf0   :  { %1604 = vmatpush1.bf16.msra.mxu1 %v2693_v45  ;;  %vm2356_vm2 = vmpackc.low %vm149_vm14, %vm148_vm1 }
  0xf1   :  { %1761 = vmatpush1.bf16.msra.mxu0 %v2696_v46  ;;  %1626 = vmatprep.subr.bf16.mxu1 %v2701_v47  ;;  %v2767_v46 = vld [vmem:[#allocation2 + $0x2b4] ss:$8 sps:$4 sm:$0xff]   ;;  %v2770_v47 = vld [vmem:[#allocation2 + $0x5a4] ss:$8 sps:$4 sm:$0xff]  }
  0xf2   :  { %1762 = vmatprep.subr.bf16.mxu0 %v2704_v49  ;;  %v2768_v49 = vld [vmem:[#allocation2 + $0x5a0] ss:$8 sps:$4 sm:$0xff]  }
  0xf3   :  { %2355 = vmatmul.mubr.msk.bf16.vlgmr.msra.gmra.mrb[0].mxu1 %vm2354_vm3, %v2914_v2  ;;  %v298_v54 = vpop.permute.xlu1 %297  ;;  %vm354_vm3 = vcmp.eq.s32.totalorder %v344_v30, %v3061_v26 }
  0xf4   :  { %1627 = vmatpush1.bf16.msra.mxu1 %v2699_v50  ;;  %2357 = vmatprep.mubr.msk.bf16.mxu1 %vm2356_vm2, %v2914_v2  ;;  %vm304_vm6 = vcmp.eq.s32.totalorder %v298_v54, %v3061_v26  ;;  %v2773_v50 = vld [vmem:[#allocation2 + $0x2c4] ss:$8 sps:$4 sm:$0xff]   ;;  %v2774_v54 = vld [vmem:[#allocation2 + $0x5b0] ss:$8 sps:$4 sm:$0xff]  }
  0xf5   :  { %1763 = vmatpush1.bf16.msra.mxu0 %v2702_v51  ;;  %1628 = vmatprep.subr.bf16.mxu1 %v2707_v52  ;;  %v2776_v52 = vld [vmem:[#allocation2 + $0x5b4] ss:$8 sps:$4 sm:$0xff]  }
  0xf6   :  { %1785 = vmatprep.subr.bf16.mxu0 %v2710_v53  ;;  %v2771_v53 = vld [vmem:[#allocation2 + $0x2c0] ss:$8 sps:$4 sm:$0xff]  }
  0xf7   :  { %v301_v60 = vpop.permute.xlu1 %300 }
  0xf8   :  { %1629 = vmatpush1.bf16.msra.mxu1 %v2705_v55  ;;  %2379 = vmatmul.mubr.msk.bf16.vlgmr.msra.gmra.mrb[0].mxu0 %vm2378_vm7, %v2914_v2  ;;  %vm305_vm8 = vcmp.eq.s32.totalorder %v301_v60, %v3061_v26  ;;  %v2779_v55 = vld [vmem:[#allocation2 + $0x2d4] ss:$8 sps:$4 sm:$0xff]   ;;  %v2785_v60 = vld [vmem:[#allocation2 + $0x2e4] ss:$8 sps:$4 sm:$0xff]  }
  0xf9   :  { %1786 = vmatpush1.bf16.msra.mxu0 %v2708_v56  ;;  %1630 = vmatprep.subr.bf16.mxu1 %v2713_v57  ;;  %vm2380_vm9 = vmpackc.low %vm305_vm8, %vm304_vm6  ;;  %v2782_v56 = vld [vmem:[#allocation2 + $0x5c4] ss:$8 sps:$4 sm:$0xff]   ;;  %vm173_vm6 = vcmp.eq.s32.totalorder %v3113_v9, %v3061_v26  ;;  %vm200_vm8 = vcmp.eq.s32.totalorder %v3118_v19, %v3061_v26 }
  0xfa   :  { %1787 = vmatprep.subr.bf16.mxu0 %v2716_v59  ;;  %2381 = vmatprep.mubr.msk.bf16.mxu0 %vm2380_vm9, %v2914_v2  ;;  %v2780_v59 = vld [vmem:[#allocation2 + $0x5c0] ss:$8 sps:$4 sm:$0xff]  }
  0xfc   :  { %1631 = vmatpush1.bf16.msra.mxu1 %v2711_v61  ;;  %v119_v5 = vpop.permute.xlu1 %118  ;;  %v2788_v61 = vld [vmem:[#allocation2 + $0x5d4] ss:$8 sps:$4 sm:$0xff]  }
  0xfd   :  { %1788 = vmatpush1.bf16.msra.mxu0 %v2714_v62  ;;  %1632 = vmatprep.subr.bf16.mxu1 %v2719_v63  ;;  %vm123_vm11 = vcmp.eq.s32.totalorder %v119_v5, %v3061_v26  ;;  %v2783_v63 = vld [vmem:[#allocation2 + $0x2e0] ss:$8 sps:$4 sm:$0xff]   ;;  %v2789_v5 = vld [vmem:[#allocation2 + $0x2f0] ss:$8 sps:$4 sm:$0xff]  }
  0xfe   :  { %1789 = vmatprep.subr.bf16.mxu0 %v2722_v0  ;;  %vm2358_vm12 = vmpackc.low %vm123_vm11, %vm122_vm10  ;;  %v2786_v0 = vld [vmem:[#allocation2 + $0x5d0] ss:$8 sps:$4 sm:$0xff]  }
  0xff   :  { %2359 = vmatmul.mubr.msk.bf16.gmra.mrb[4].mxu1 %vm2358_vm12, %v2914_v2 }
 0x100   :  { %1633 = vmatpush1.bf16.msra.mxu1 %v2717_v4  ;;  %v2794_v4 = vld [vmem:[#allocation2 + $0x5e4] ss:$8 sps:$4 sm:$0xff]  }
 0x101   :  { %1790 = vmatpush1.bf16.msra.mxu0 %v2720_v6  ;;  %1634 = vmatprep.subr.bf16.mxu1 %v2725_v7  ;;  %v272_v12 = vpop.permute.xlu1 %271  ;;  %v2792_v6 = vld [vmem:[#allocation2 + $0x5e0] ss:$8 sps:$4 sm:$0xff]  }
 0x102   :  { %1791 = vmatprep.subr.bf16.mxu0 %v2728_v8  ;;  %vm278_vm14 = vcmp.eq.s32.totalorder %v272_v12, %v3061_v26  ;;  %v2797_v8 = vld [vmem:[#allocation2 + $0x5f4] ss:$8 sps:$4 sm:$0xff]  }
 0x103   :  { %vm2382_vm15 = vmpackc.low %vm279_vm13, %vm278_vm14 }
 0x104   :  { %1635 = vmatpush1.bf16.msra.mxu1 %v2723_v10  ;;  %2383 = vmatmul.mubr.msk.bf16.gmra.mrb[4].mxu0 %vm2382_vm15, %v2914_v2  ;;  %v2795_v10 = vld [vmem:[#allocation2 + $0x5f0] ss:$8 sps:$4 sm:$0xff]  }
 0x105   :  { %1792 = vmatpush1.bf16.msra.mxu0 %v2726_v11  ;;  %1636 = vmatprep.subr.bf16.mxu1 %v2731_v14  ;;  %v353_v11 = vpop.permute.xlu0 %352 }
 0x106   :  { %1793 = vmatprep.subr.bf16.mxu0 %v2734_v15  ;;  %v188_v21 = vpop.permute.xlu1 %187  ;;  %vm357_vm15 = vcmp.eq.s32.totalorder %v353_v11, %v3061_v26 }
 0x107   :  { %vm198_vm0 = vcmp.eq.s32.totalorder %v188_v21, %v3061_v26 }
 0x108   :  { %1637 = vmatpush1.bf16.msra.mxu1 %v2729_v16 }
 0x109   :  { %1794 = vmatpush1.bf16.msra.mxu0 %v2732_v17  ;;  %1638 = vmatprep.subr.bf16.mxu1 %v2737_v18  ;;  %v324_v14 = vpop.permute.xlu0 %323 }
 0x10a   :  { %1795 = vmatprep.subr.bf16.mxu0 %v2740_v23  ;;  %v191_v3 = vpop.permute.xlu1 %190 }
 0x10b   :  { %vm199_vm1 = vcmp.eq.s32.totalorder %v191_v3, %v3061_v26 }
 0x10c   :  { %1639 = vmatpush1.bf16.msra.mxu1 %v2735_v24  ;;  %vm2360_vm2 = vmpackc.low %vm199_vm1, %vm198_vm0 }
 0x10d   :  { %1796 = vmatpush1.bf16.msra.mxu0 %v2738_v27  ;;  %1640 = vmatprep.subr.bf16.mxu1 %v2743_v28 }
 0x10e   :  { %1797 = vmatprep.subr.bf16.mxu0 %v2746_v29  ;;  %2361 = vmatprep.mubr.msk.bf16.mxu1 %vm2360_vm2, %v2914_v2 }
 0x10f   :  { %v347_v34 = vpop.permute.xlu1 %346 }
 0x110   :  { %1641 = vmatpush1.bf16.msra.mxu1 %v2741_v31  ;;  %vm355_vm4 = vcmp.eq.s32.totalorder %v347_v34, %v3061_v26 }
 0x111   :  { %1798 = vmatpush1.bf16.msra.mxu0 %v2744_v20  ;;  %1642 = vmatprep.subr.bf16.mxu1 %v2749_v32  ;;  %vm2384_vm5 = vmpackc.low %vm355_vm4, %vm354_vm3 }
 0x112   :  { %1799 = vmatprep.subr.bf16.mxu0 %v2752_v33  ;;  %2385 = vmatprep.mubr.msk.bf16.mxu0 %vm2384_vm5, %v2914_v2 }
 0x114   :  { %1643 = vmatpush1.bf16.msra.mxu1 %v2747_v35  ;;  %v3126_v40 = vpop.permute.xlu1 %161 }
 0x115   :  { %1800 = vmatpush1.bf16.msra.mxu0 %v2750_v36  ;;  %1644 = vmatprep.subr.bf16.mxu1 %v2755_v37  ;;  %vm172_vm7 = vcmp.eq.s32.totalorder %v3126_v40, %v3061_v26 }
 0x116   :  { %1801 = vmatprep.subr.bf16.mxu0 %v2758_v38  ;;  %vm2362_vm10 = vmpackc.low %vm173_vm6, %vm172_vm7  ;;  %vm330_vm6 = vcmp.eq.s32.totalorder %v324_v14, %v3061_v26 }
 0x118   :  { %1645 = vmatpush1.bf16.msra.mxu1 %v2753_v39 }
 0x119   :  { %1802 = vmatpush1.bf16.msra.mxu0 %v2756_v41  ;;  %1646 = vmatprep.subr.bf16.mxu1 %v2761_v42  ;;  %v3128_v45 = vpop.permute.xlu1 %317  ;;  %v2798_v42 = vld [vmem:[#allocation5] ss:$8 sps:$4 sm:$0xff]  }
 0x11a   :  { %1803 = vmatprep.subr.bf16.mxu0 %v2764_v43  ;;  %vm328_vm12 = vcmp.eq.s32.totalorder %v3128_v45, %v3061_v26  ;;  %v2800_v43 = vld [vmem:[#allocation5 + $0x4] ss:$8 sps:$4 sm:$0xff]  }
 0x11b   :  { %v2806_v45 = vld [vmem:[#allocation5 + $0x24] ss:$8 sps:$4 sm:$0xff]  }
 0x11c   :  { %1647 = vmatpush1.bf16.msra.mxu1 %v2759_v25  ;;  %v2803_v25 = vld [vmem:[#allocation5 + $0x14] ss:$8 sps:$4 sm:$0xff]  }
 0x11d   :  { %1804 = vmatpush1.bf16.msra.mxu0 %v2762_v44  ;;  %1648 = vmatprep.subr.bf16.mxu1 %v2767_v46  ;;  %v321_v51 = vpop.permute.xlu1 %320  ;;  %v2801_v44 = vld [vmem:[#allocation5 + $0x10] ss:$8 sps:$4 sm:$0xff]   ;;  %v2804_v46 = vld [vmem:[#allocation5 + $0x20] ss:$8 sps:$4 sm:$0xff]  }
 0x11e   :  { %1805 = vmatprep.subr.bf16.mxu0 %v2770_v47  ;;  %vm329_vm13 = vcmp.eq.s32.totalorder %v321_v51, %v3061_v26  ;;  %v2809_v47 = vld [vmem:[#allocation5 + $0x34] ss:$8 sps:$4 sm:$0xff]   ;;  %v2813_v51 = vld [vmem:[#allocation5 + $0x50] ss:$8 sps:$4 sm:$0xff]  }
 0x11f   :  { %vm2386_vm0 = vmpackc.low %vm329_vm13, %vm328_vm12 }
 0x120   :  { %1649 = vmatpush1.bf16.msra.mxu1 %v2765_v48  ;;  %v2807_v48 = vld [vmem:[#allocation5 + $0x30] ss:$8 sps:$4 sm:$0xff]  }
 0x121   :  { %1806 = vmatpush1.bf16.msra.mxu0 %v2768_v49  ;;  %1650 = vmatprep.subr.bf16.mxu1 %v2773_v50  ;;  %v2812_v49 = vld [vmem:[#allocation5 + $0x44] ss:$8 sps:$4 sm:$0xff]   ;;  %v2810_v50 = vld [vmem:[#allocation5 + $0x40] ss:$8 sps:$4 sm:$0xff]  }
 0x122   :  { %1807 = vmatprep.subr.bf16.mxu0 %v2776_v52  ;;  %v197_v57 = vpop.permute.xlu1 %196  ;;  %v2815_v52 = vld [vmem:[#allocation5 + $0x54] ss:$8 sps:$4 sm:$0xff]  }
 0x123   :  { %vm201_vm9 = vcmp.eq.s32.totalorder %v197_v57, %v3061_v26 }
 0x124   :  { %1651 = vmatpush1.bf16.msra.mxu1 %v2771_v53  ;;  %vm2364_vm11 = vmpackc.low %vm201_vm9, %vm200_vm8  ;;  %v2818_v53 = vld [vmem:[#allocation5 + $0x64] ss:$8 sps:$4 sm:$0xff]   ;;  %vm1921_vm8 = vcmask 261120   ;;  %vm1923_vm9 = vcmask 523264  }
 0x125   :  { %1808 = vmatpush1.bf16.msra.mxu0 %v2774_v54  ;;  %1652 = vmatprep.subr.bf16.mxu1 %v2779_v55 }
 0x126   :  { %1809 = vmatprep.subr.bf16.mxu0 %v2782_v56  ;;  %v2816_v56 = vld [vmem:[#allocation5 + $0x60] ss:$8 sps:$4 sm:$0xff]  }
 0x127   :  { %v350_v62 = vpop.permute.xlu1 %349 }
 0x128   :  { %1653 = vmatpush1.bf16.msra.mxu1 %v2777_v58  ;;  %vm356_vm14 = vcmp.eq.s32.totalorder %v350_v62, %v3061_v26 }
 0x129   :  { %1810 = vmatpush1.bf16.msra.mxu0 %v2780_v59  ;;  %1654 = vmatprep.subr.bf16.mxu1 %v2785_v60  ;;  %vm2388_vm3 = vmpackc.low %vm357_vm15, %vm356_vm14  ;;  %v2392_v59 = vld [vmem:[%s3195_s2] ss:$0 sm:$0xff] }
 0x12a   :  { %1811 = vmatprep.subr.bf16.mxu0 %v2788_v61 }
 0x12c   :  { %1655 = vmatpush1.bf16.msra.mxu1 %v2783_v63  ;;  %v168_v7 = vpop.permute.xlu1 %167 }
 0x12d   :  { %1812 = vmatpush1.bf16.msra.mxu0 %v2786_v0  ;;  %1656 = vmatprep.subr.bf16.mxu1 %v2791_v1  ;;  %vm174_vm1 = vcmp.eq.s32.totalorder %v168_v7, %v3061_v26  ;;  %v2821_v0 = vld [vmem:[#allocation5 + $0x74] ss:$8 sps:$4 sm:$0xff]  }
 0x12e   :  { %1813 = vmatprep.subr.bf16.mxu0 %v2794_v4  ;;  %v2819_v4 = vld [vmem:[#allocation5 + $0x70] ss:$8 sps:$4 sm:$0xff]  }
 0x130   :  { %1657 = vmatpush1.bf16.msra.mxu1 %v2789_v5  ;;  %v171_v12 = vpop.permute.xlu1 %170 }
 0x131   :  { %1814 = vmatpush1.bf16.msra.mxu0 %v2792_v6  ;;  %vm175_vm2 = vcmp.eq.s32.totalorder %v171_v12, %v3061_v26  ;;  %2036 = vmatprep.subr.bf16.mxu1 %v2800_v43 }
 0x132   :  { %1815 = vmatprep.subr.bf16.mxu0 %v2797_v8  ;;  %vm2366_vm4 = vmpackc.low %vm175_vm2, %vm174_vm1 }
 0x133   :  { %2363 = vmatmul.mubr.msk.bf16.vlgmr.msra.gmra.mrb[0].mxu1 %vm2362_vm10, %v2914_v2  ;;  %vm1925_vm10 = vcmask 785408  }
 0x134   :  { %2365 = vmatprep.mubr.msk.bf16.mxu1 %vm2364_vm11, %v2914_v2  ;;  %2037 = vmatpush1.bf16.msra.mxu1 %v2798_v42 }
 0x135   :  { %1816 = vmatpush1.bf16.msra.mxu0 %v2795_v10  ;;  %v327_v9 = vpop.permute.xlu1 %326  ;;  %2038 = vmatprep.subr.bf16.mxu1 %v2803_v25 }
 0x136   :  { %vm331_vm5 = vcmp.eq.s32.totalorder %v327_v9, %v3061_v26 }
 0x137   :  { %vm2390_vm7 = vmpackc.low %vm331_vm5, %vm330_vm6 }
 0x138   :  { %2387 = vmatmul.mubr.msk.bf16.vlgmr.msra.gmra.mrb[0].mxu0 %vm2386_vm0, %v2914_v2  ;;  %2039 = vmatpush1.bf16.msra.mxu1 %v2801_v44 }
 0x139   :  { %2389 = vmatprep.mubr.msk.bf16.mxu0 %vm2388_vm3, %v2914_v2  ;;  %2040 = vmatprep.subr.bf16.mxu1 %v2806_v45 }
 0x13b   :  { %2367 = vmatmul.mubr.msk.bf16.gmra.mrb[4].mxu1 %vm2366_vm4, %v2914_v2 }
 0x13c   :  { %2068 = vmatprep.mubr.bf16.mxu1 %v2904_v13  ;;  %2041 = vmatpush1.bf16.msra.mxu1 %v2804_v46 }
 0x13d   :  { %2042 = vmatprep.subr.bf16.mxu1 %v2809_v47 }
 0x140   :  { %2391 = vmatmul.mubr.msk.bf16.gmra.mrb[4].mxu0 %vm2390_vm7, %v2914_v2  ;;  %2043 = vmatpush1.bf16.msra.mxu1 %v2807_v48 }
 0x141   :  { %2044 = vmatprep.subr.bf16.mxu1 %v2812_v49 }
 0x144   :  { %2045 = vmatpush1.bf16.msra.mxu1 %v2810_v50 }
 0x145   :  { %2046 = vmatprep.subr.bf16.mxu1 %v2815_v52 }
 0x148   :  { %2047 = vmatpush1.bf16.msra.mxu1 %v2813_v51 }
 0x149   :  { %2048 = vmatprep.subr.bf16.mxu1 %v2818_v53 }
 0x14c   :  { %2049 = vmatpush1.bf16.msra.mxu1 %v2816_v56 }
 0x14d   :  { %2050 = vmatprep.subr.bf16.mxu1 %v2821_v0 }
 0x150   :  { %2051 = vmatpush1.bf16.msra.mxu1 %v2819_v4 }
 0x206   :  { %v1660_v15 = vpop.f32.mrb[0].mxu1 }
 0x207   :  { %v1662_v16 = vpop.f32.mrb[1].mxu1 }
 0x208   :  { %v1664_v17 = vpop.f32.mrb[2].mxu1 }
 0x209   :  { %v1666_v18 = vpop.f32.mrb[3].mxu1 }
 0x20b   :  { %v1819_v19 = vpop.f32.mrb[0].mxu0 }
 0x20c   :  { %v2410_v21 = vadd.f32 %v1819_v19, %v1660_v15  ;;  %v1821_v23 = vpop.f32.mrb[1].mxu0 }
 0x20d   :  { %v2411_v24 = vadd.f32 %v1821_v23, %v1662_v16  ;;  %v1823_v27 = vpop.f32.mrb[2].mxu0 }
 0x20e   :  { %v2412_v28 = vadd.f32 %v1823_v27, %v1664_v17  ;;  %v1670_v3 = vpop.f32.mrb[4].mxu1  ;;  %v1825_v29 = vpop.f32.mrb[3].mxu0 }
 0x20f   :  { %v3153_v26 = vmax.f32 %v2410_v21, %v2411_v24  ;;  %v2413_v30 = vadd.f32 %v1825_v29, %v1666_v18  ;;  %v1672_v31 = vpop.f32.mrb[5].mxu1 }
 0x210   :  { %v1674_v13 = vpop.f32.mrb[6].mxu1 }
 0x211   :  { %v1839_v20 = vmax.f32 %v2412_v28, %v2413_v30  ;;  %v1676_v32 = vpop.f32.mrb[7].mxu1 }
 0x213   :  { %1864 = vrot.lane.b32.xlu0 %v1839_v20, %s2915_s0  ;;  %1848 = vrot.lane.b32.xlu1 %v1839_v20, %s2916_s25  ;;  %v1829_v2 = vpop.f32.mrb[4].mxu0 }
 0x214   :  { %v2414_v33 = vadd.f32 %v1829_v2, %v1670_v3  ;;  %v1831_v34 = vpop.f32.mrb[5].mxu0 }
 0x215   :  { %v2415_v35 = vadd.f32 %v1831_v34, %v1672_v31  ;;  %v1833_v36 = vpop.f32.mrb[6].mxu0 }
 0x216   :  { %v2416_v37 = vadd.f32 %v1833_v36, %v1674_v13  ;;  %v1835_v38 = vpop.f32.mrb[7].mxu0  ;;  %v1947_v36 = vshrl.u32 %v54_v22, 7 }
 0x217   :  { %v1840_v39 = vmax.f32 %v2414_v33, %v2415_v35  ;;  %v2417_v40 = vadd.f32 %v1835_v38, %v1676_v32  ;;  %1880 = vrot.lane.b32.xlu1 %v1839_v20, %s2917_s26 }
 0x218   :  { %v1948_v44 = vsub.s32 0, %v1947_v36 }
 0x219   :  { %v1841_v41 = vmax.f32 %v2416_v37, %v2417_v40  ;;  %1850 = vrot.lane.b32.xlu0 %v1840_v39, %s2916_s25  ;;  %v1944_v37 = vld [vmem:[%s3197_s4] sm:$0x3]  ;;  %s2870_s4 = scalar_lea.vmem %s2095_s6, 128 }
 0x21a   :  { %v1949_v46 = vrot.slane %v1944_v37, %v1948_v44  ;;  %p2871_p2 = scmp.ne.s32.totalorder %s2095_s6, %s2870_s4  ;;  %p2876_p4 = scmp.lt.s32.totalorder %s2870_s4, %s2870_s4 }
 0x21b   :  { %1866 = vrot.lane.b32.xlu1 %v1840_v39, %s2915_s0 }
 0x21c   :  { %p2877_p5 = por %p2876_p4, %p2875_p3 }
 0x21d   :  { %1868 = vrot.lane.b32.xlu0 %v1841_v41, %s2915_s0 }
 0x21e   :  { %p2878_p6 = pnand %p2877_p5, %p2871_p2 }
 0x21f   :  { %1852 = vrot.lane.b32.xlu1 %v1841_v41, %s2916_s25 }
 0x221   :  { %1882 = vrot.lane.b32.xlu0 %v1840_v39, %s2917_s26 }
 0x223   :  { %1884 = vrot.lane.b32.xlu1 %v1841_v41, %s2917_s26 }
 0x225   :  { %1846 = vrot.lane.b32.xlu0 %v3153_v26, %s2916_s25 }
 0x227   :  { %1862 = vrot.lane.b32.xlu1 %v3153_v26, %s2915_s0 }
 0x229   :  { %1878 = vrot.lane.b32.xlu0 %v3153_v26, %s2917_s26 }
 0x285   :  { %v1849_v54 = vpop.permute.xlu1 %1848  ;;  %v1865_v57 = vpop.permute.xlu0 %1864 }
 0x286   :  { %v1859_v55 = vmax.f32 %v1839_v20, %v1849_v54 }
 0x288   :  { %v1875_v58 = vmax.f32 %v1859_v55, %v1865_v57 }
 0x289   :  { %v1881_v60 = vpop.permute.xlu1 %1880 }
 0x28a   :  { %v1891_v61 = vmax.f32 %v1875_v58, %v1881_v60 }
 0x28b   :  { %v1851_v62 = vpop.permute.xlu0 %1850 }
 0x28c   :  { %v1902_v63 = vadd.f32 %v2392_v59, %v1891_v61  ;;  %v1860_v6 = vmax.f32 %v1840_v39, %v1851_v62 }
 0x28d   :  { %v1867_v1 = vpop.permute.xlu1 %1866 }
 0x28e   :  { %v1906_v5 = vmax.f32 %v1902_v63, 0.0  ;;  %v1876_v10 = vmax.f32 %v1860_v6, %v1867_v1 }
 0x28f   :  { %v1869_v7 = vpop.permute.xlu0 %1868 }
 0x290   :  { %1910 = vrot.lane.b32.xlu1 %v1906_v5, %s2917_s26 }
 0x291   :  { %v1853_v8 = vpop.permute.xlu1 %1852 }
 0x292   :  { %v1861_v11 = vmax.f32 %v1841_v41, %v1853_v8 }
 0x293   :  { %v1883_v12 = vpop.permute.xlu0 %1882 }
 0x294   :  { %v1892_v9 = vmax.f32 %v1876_v10, %v1883_v12  ;;  %v1877_v14 = vmax.f32 %v1861_v11, %v1869_v7 }
 0x295   :  { %v1885_v15 = vpop.permute.xlu1 %1884 }
 0x296   :  { %v1903_v16 = vadd.f32 %v2392_v59, %v1892_v9  ;;  %v1893_v17 = vmax.f32 %v1877_v14, %v1885_v15 }
 0x297   :  { %v1847_v23 = vpop.permute.xlu0 %1846 }
 0x298   :  { %v1907_v18 = vmax.f32 %v1903_v16, 0.0  ;;  %v1904_v19 = vadd.f32 %v2392_v59, %v1893_v17  ;;  %v1858_v24 = vmax.f32 %v3153_v26, %v1847_v23  ;;  %v1952_v26 = vsub.s32 1, %v1947_v36 }
 0x299   :  { %v1863_v27 = vpop.permute.xlu1 %1862 }
 0x29a   :  { %v1908_v21 = vmax.f32 %v1904_v19, 0.0  ;;  %1914 = vrot.lane.b32.xlu0 %v1907_v18, %s2915_s0  ;;  %v1874_v28 = vmax.f32 %v1858_v24, %v1863_v27  ;;  %v1953_v38 = vrot.slane %v1944_v37, %v1952_v26 }
 0x29b   :  { %v1879_v3 = vpop.permute.xlu0 %1878 }
 0x29c   :  { %1918 = vrot.lane.b32.xlu1 %v1908_v21, %s2916_s25  ;;  %v1890_v29 = vmax.f32 %v1874_v28, %v1879_v3 }
 0x29e   :  { %v1901_v30 = vadd.f32 %v2392_v59, %v1890_v29 }
 0x2a0   :  { %v1905_v13 = vmax.f32 %v1901_v30, 0.0 }
 0x302   :  { %v1911_v31 = vpop.permute.xlu1 %1910 }
 0x303   :  { %v1922_v20 = vsel %vm1921_vm8, %v1905_v13, %v1911_v31 }
 0x30c   :  { %v1915_v32 = vpop.permute.xlu0 %1914 }
 0x30d   :  { %v1924_v2 = vsel %vm1923_vm9, %v1922_v20, %v1915_v32 }
 0x30e   :  { %v1919_v33 = vpop.permute.xlu1 %1918 }
 0x30f   :  { %v1926_v34 = vsel %vm1925_vm10, %v1924_v2, %v1919_v33 }
 0x310   :  { %v1927_v35 = vpack.c.bf16 %v1926_v34, %v1926_v34 }
 0x312   :  { %2069 = vmatmul.mubr.bf16.vlgmr.msra.gmra.mrb[8].mxu1 %v1927_v35 }
 0x3e5   :  { %v2070_v39 = vpop.f32.mrb[8].mxu1 }
 0x3e6   :  { %v2072_v40 = vpop.f32.mrb[9].mxu1  ;;  %v2071_v48 = vadd.f32 %v2070_v39, %v1949_v46 }
 0x3e7   :  { %v2073_v41 = vadd.f32 %v2072_v40, %v1953_v38  ;;  %v2074_v42 = vpop.f32.mrb[10].mxu1 }
 0x3e8   :  { %v2075_v43 = vpop.f32.mrb[11].mxu1  ;;  %v2077_v22 = vmax.f32 %v2071_v48, 0.0 }
 0x3e9   :  { %v2409_v25 = vmul.f32 -1.442695, %v2073_v41 }
 0x3ea   :  { %v2084_v49 = vsub.f32 %v2077_v22, %v1926_v34 }
 0x3eb   :  { %2822 = vpow2.f32 %v2409_v25 }
 0x3f5   :  { %v2823_v45 = vpop.eup %2822 }
 0x3f6   :  { %v2081_v47 = vadd.f32 1.0, %v2823_v45 }
 0x3f8   :  { %2824 = vrcp.f32 %v2081_v47 }
 0x402   :  { %v2825_v50 = vpop.eup %2824 }
 0x403   :  { %v2085_v51 = vmul.f32 %v2825_v50, %v2084_v49 }
 0x405   :  { %v2086_v52 = vadd.f32 %v2085_v51, %v1926_v34 }
 0x407   :  { %2087 = vst [vmem:[#allocation7] sm:$0xff] %v2086_v52 }
 0x408   :  { %2881 = shalt.err (!%p2878_p6)
}
 0x409   :  { %s2882_s9 = scalar_lea.hbm %s3198_s5, 128 }
 0x40a   :  { %p2883_p7 = scmp.ne.s32.totalorder %s3198_s5, %s2882_s9  ;;  %p2886_p8 = scmp.lt.u32.totalorder %s2882_s9, %s3198_s5 }
 0x40c   :  { %p2888_p9 = pnand %p2886_p8, %p2883_p7 }
 0x40e   :  { %2891 = shalt.err (!%p2888_p9)
}
 0x40f   :  { %2097 = dma.vmem_to_hbm [thread:$0]  %s2095_s6, 128, %s3198_s5, [#allocation4]  }
 0x410   :  { %2896 = dma.done.wait [#allocation4], 128  }
 0x411   :  { %2897 = vsyncadd [#allocation4], 4294967168 }
 0x412   :  { %2101 = vsyncpa [#allocation3], 1 }
 0x413   :  { %2102 = vsyncpa [#allocation6], 1 }
 0x414   :  { %2103 = vsyncpa [#allocation4], 1 }

</bundles_post_ra>
